<compile_context>
chip_gen: v6e
topology: v6e:2x2x1
jax: 0.10.0
libtpu: 0.0.40
codegen_flags: <defaults>
</compile_context>

<pallas_src>
import functools

import jax
import jax.numpy as jnp
from jax.experimental import pallas as pl
from jax.experimental.pallas import tpu as pltpu


_LN_EPS = 1e-5


def _round_up(x, m):
    return ((x + m - 1) // m) * m


# --------------------- per-generation tuning & capability probes ---------------------

@functools.lru_cache(maxsize=None)
def _hw_tuning():
    """Per-TPU-generation tuning: (vmem_limit_bytes, target_rows).

    128-MiB-VMEM chips (v5e/v6e) -> 96 MiB scoped limit, ~1024-row tiles.
    64-MiB chips (v7x) or unknown -> conservative 48 MiB, ~512-row tiles.
    """
    cap = 0
    try:
        cap = int(getattr(pltpu.get_tpu_info(), "vmem_capacity_bytes", 0))
    except Exception:
        cap = 0
    if cap >= 100 * 1024 * 1024:
        return 96 * 1024 * 1024, 1024
    return 48 * 1024 * 1024, 512


def _copy_probe_kernel(x_ref, o_ref):
    o_ref[...] = x_ref[...]


@functools.lru_cache(maxsize=None)
def _single_buffer_weights_supported():
    """pl.Buffered(1) single-buffers grid-invariant weights (halves their VMEM,
    which matters at real model sizes on v7x).  Probe once; fall back to the
    default double-buffered pipeline if this jax/Mosaic build rejects it."""
    try:
        fn = pl.pallas_call(
            _copy_probe_kernel,
            out_shape=jax.ShapeDtypeStruct((8, 128), jnp.float32),
            grid=(2,),
            in_specs=[pl.BlockSpec((8, 128), lambda i: (0, 0),
                                   pipeline_mode=pl.Buffered(1))],
            out_specs=pl.BlockSpec((8, 128), lambda i: (0, 0)),
        )
        jax.block_until_ready(fn(jnp.zeros((8, 128), jnp.float32)))
        return True
    except Exception:
        return False


def _weight_spec(shape, single_buffer):
    index_map = lambda i: (0,) * len(shape)
    if single_buffer:
        return pl.BlockSpec(shape, index_map, pipeline_mode=pl.Buffered(1))
    return pl.BlockSpec(shape, index_map)


# ----------------------------- Pallas kernels -----------------------------

def _patch_linear_kernel(x_ref, w_ref, b_ref, o_ref):
    acc = jnp.dot(x_ref[...], w_ref[...], preferred_element_type=jnp.float32)
    o_ref[...] = (acc + b_ref[...]).astype(o_ref.dtype)


def _swin_block_kernel(*refs, num_heads, has_mask):
    """Fully fused Swin block on a batch of windows (WB, N, C):

        y   = x + gamma1 * WindowAttention(LN1(x) * valid_mask)
        out = y + gamma2 * MLP(LN2(y))

    MXU matmuls take bf16 operands with f32 accumulation; LN / softmax / GELU
    and the residuals are computed in f32.  The attention softmax scale is
    pre-folded into the Q columns of wqkv/bqkv at parameter-prep time.
    """
    if has_mask:
        (x_ref, m_ref, ln1g_ref, ln1b_ref, wqkv_ref, bqkv_ref, g1_ref,
         ln2g_ref, ln2b_ref, w1_ref, b1_ref, w2_ref, b2_ref, g2_ref,
         o_ref) = refs
    else:
        (x_ref, ln1g_ref, ln1b_ref, wqkv_ref, bqkv_ref, g1_ref,
         ln2g_ref, ln2b_ref, w1_ref, b1_ref, w2_ref, b2_ref, g2_ref,
         o_ref) = refs
        m_ref = None

    x = x_ref[...].astype(jnp.float32)                        # (WB, N, C)
    wb, n, c = x.shape
    hd = c // num_heads

    # ---- LN1 (f32 stats); zero padded tokens (reference pads after norm1) ----
    mu = jnp.mean(x, axis=-1, keepdims=True)
    var = jnp.mean((x - mu) ** 2, axis=-1, keepdims=True)
    xn = (x - mu) * jax.lax.rsqrt(var + _LN_EPS) * ln1g_ref[...] + ln1b_ref[...]
    if m_ref is not None:
        xn = xn * m_ref[...]

    # ---- fused QKV projection (bf16 MXU operands, f32 accumulation) ----
    qkv = jnp.dot(xn.reshape(wb * n, c).astype(jnp.bfloat16), wqkv_ref[...],
                  preferred_element_type=jnp.float32) + bqkv_ref[...]
    qkv = qkv.reshape(wb, n, 3 * c)

    # ---- window attention.  Heads stay a short static loop (Mosaic
    # dot_general supports one leading batch dim only), but the epilogue is a
    # single full-width context + ONE lane-dense (WB, N, C) store. ----
    ctx_heads = []
    for h in range(num_heads):
        qh = qkv[:, :, h * hd:(h + 1) * hd].astype(jnp.bfloat16)      # scaled
        kh = qkv[:, :, c + h * hd:c + (h + 1) * hd].astype(jnp.bfloat16)
        vh = qkv[:, :, 2 * c + h * hd:2 * c + (h + 1) * hd].astype(jnp.bfloat16)
        a = jnp.einsum('wqd,wkd->wqk', qh, kh,
                       preferred_element_type=jnp.float32)            # (WB,N,N)
        a = a - jnp.max(a, axis=-1, keepdims=True)
        e = jnp.exp(a)
        p = e * pl.reciprocal(jnp.sum(e, axis=-1, keepdims=True), approx=True)
        ctx_heads.append(jnp.einsum('wqk,wkd->wqd', p.astype(jnp.bfloat16), vh,
                                    preferred_element_type=jnp.float32))
    ctx = jnp.concatenate(ctx_heads, axis=-1)                          # (WB,N,C)
    y = x + g1_ref[...] * ctx                        # layer-scale residual (f32)

    # ---- LN2 + MLP(GELU exact) + layer-scale residual ----
    yf = y.reshape(wb * n, c)
    mu2 = jnp.mean(yf, axis=-1, keepdims=True)
    var2 = jnp.mean((yf - mu2) ** 2, axis=-1, keepdims=True)
    yn = (yf - mu2) * jax.lax.rsqrt(var2 + _LN_EPS) * ln2g_ref[...] + ln2b_ref[...]
    h1 = jnp.dot(yn.astype(jnp.bfloat16), w1_ref[...],
                 preferred_element_type=jnp.float32) + b1_ref[...]
    h1 = 0.5 * h1 * (1.0 + jax.lax.erf(h1 * 0.7071067811865476))       # exact GELU
    h2 = jnp.dot(h1.astype(jnp.bfloat16), w2_ref[...],
                 preferred_element_type=jnp.float32) + b2_ref[...]
    out = yf + g2_ref[...] * h2
    o_ref[...] = out.reshape(wb, n, c).astype(o_ref.dtype)   # one lane-dense store


# ----------------------------- Pallas wrappers -----------------------------

def patch_linear_pallas(x, w, b, vmem_limit, max_rows, single_buffer):
    m, k = x.shape
    n = w.shape[1]
    tm = min(max_rows, _round_up(m, 16))
    if m >= 64:
        # keep >= ~4 grid steps so the pipeline (and both v7x TCs) have work
        tm = min(tm, _round_up(max(m // 4, 16), 16))
    m_pad = _round_up(m, tm)
    xp = jnp.pad(x, ((0, m_pad - m), (0, 0))) if m_pad != m else x
    out = pl.pallas_call(
        _patch_linear_kernel,
        out_shape=jax.ShapeDtypeStruct((m_pad, n), jnp.bfloat16),
        grid=(m_pad // tm,),
        in_specs=[pl.BlockSpec((tm, k), lambda i: (i, 0)),
                  _weight_spec((k, n), single_buffer),
                  _weight_spec((1, n), single_buffer)],
        out_specs=pl.BlockSpec((tm, n), lambda i: (i, 0)),
        compiler_params=pltpu.CompilerParams(
            dimension_semantics=("parallel",),
            vmem_limit_bytes=vmem_limit),
    )(xp, w, b)
    return out[:m] if m_pad != m else out


def swin_block_pallas(xw, mask, blk, num_heads, wb, vmem_limit, single_buffer):
    nw, n, c = xw.shape
    hidden = blk["fc1_w"].shape[1]
    has_mask = mask is not None
    kernel = functools.partial(_swin_block_kernel, num_heads=num_heads,
                               has_mask=has_mask)

    in_specs = [pl.BlockSpec((wb, n, c), lambda i: (i, 0, 0))]
    args = [xw]
    if has_mask:
        in_specs.append(pl.BlockSpec((wb, n, 1), lambda i: (i, 0, 0)))
        args.append(mask)
    weight_shapes = [(1, c), (1, c), (c, 3 * c), (1, 3 * c), (1, c),
                     (1, c), (1, c), (c, hidden), (1, hidden),
                     (hidden, c), (1, c), (1, c)]
    in_specs += [_weight_spec(s, single_buffer) for s in weight_shapes]
    args += [blk["ln1_g"], blk["ln1_b"], blk["wqkv"], blk["bqkv"], blk["gamma1"],
             blk["ln2_g"], blk["ln2_b"], blk["fc1_w"], blk["fc1_b"],
             blk["fc2_w"], blk["fc2_b"], blk["gamma2"]]

    return pl.pallas_call(
        kernel,
        out_shape=jax.ShapeDtypeStruct((nw, n, c), xw.dtype),
        grid=(nw // wb,),
        in_specs=in_specs,
        out_specs=pl.BlockSpec((wb, n, c), lambda i: (i, 0, 0)),
        compiler_params=pltpu.CompilerParams(
            dimension_semantics=("parallel",),
            vmem_limit_bytes=vmem_limit),
    )(*args)


# ----------------------------- glue (plain JAX, done once) -----------------------------

def partition_windows(x, window_size):
    # x: (B, D, H, W, C) -> (NW, N, C); zero-pads spatial dims (like the ref).
    b, d, h, w, c = x.shape
    wd, wh, ww = window_size
    pd, ph, pw = (-d) % wd, (-h) % wh, (-w) % ww
    xp = jnp.pad(x, ((0, 0), (0, pd), (0, ph), (0, pw), (0, 0)))
    dp, hp, wp = d + pd, h + ph, w + pw
    xw = xp.reshape(b, dp // wd, wd, hp // wh, wh, wp // ww, ww, c)
    xw = jnp.transpose(xw, (0, 1, 3, 5, 2, 4, 6, 7))
    return xw.reshape(-1, wd * wh * ww, c)


def reverse_windows(tokens, window_size, b, d, h, w):
    wd, wh, ww = window_size
    dp, hp, wp = d + (-d) % wd, h + (-h) % wh, w + (-w) % ww
    c = tokens.shape[-1]
    x = tokens.reshape(b, dp // wd, hp // wh, wp // ww, wd, wh, ww, c)
    x = jnp.transpose(x, (0, 1, 4, 2, 5, 3, 6, 7)).reshape(b, dp, hp, wp, c)
    return x[:, :d, :h, :w, :]


def patch_embed_forward(x, w_flat, b_row, vmem_limit, max_rows, single_buffer):
    # Conv3d(in_ch, embed, kernel=4, stride=4, pad=0) as patchify + matmul.
    bsz, cin, d, h, wdt = x.shape
    k = 4
    dp, hp, wp = d // k, h // k, wdt // k
    xc = x[:, :, :dp * k, :hp * k, :wp * k]
    patches = xc.reshape(bsz, cin, dp, k, hp, k, wp, k)
    patches = jnp.transpose(patches, (0, 2, 4, 6, 1, 3, 5, 7))
    patches = patches.reshape(bsz * dp * hp * wp, cin * k ** 3).astype(jnp.bfloat16)
    embed_dim = w_flat.shape[1]
    out = patch_linear_pallas(patches, w_flat, b_row, vmem_limit, max_rows,
                              single_buffer)
    return out.reshape(bsz, dp, hp, wp, embed_dim)             # channel-last bf16


def _choose_window_batch(nw, n, c, hidden, num_heads, target_rows, vmem_limit):
    """Windows per grid step: ~target_rows rows to the MXU, capped so the
    fused block kernel fits the per-generation VMEM budget and the grid keeps
    >= ~4 steps (pipelining + both v7x TensorCores) whenever nw allows."""
    wb = max(1, target_rows // max(n, 1))
    per_win = (4 * n * c * 2                      # bf16 in/out blocks, 2x buffered
               + n * 3 * c * 4                    # qkv (f32)
               + num_heads * n * n * 4            # attention scores (f32)
               + n * hidden * 4                   # MLP hidden (f32)
               + 4 * n * c * 4)                   # LN / ctx / residual temporaries
    weight_bytes = 2 * (3 * c * c + 2 * c * hidden) * 2        # bf16, worst case
    budget = max(vmem_limit - weight_bytes, vmem_limit // 8)
    wb = min(wb, max(1, budget // max(per_win, 1)))
    wb = min(wb, nw)
    wb = max(1, min(wb, max(1, nw // 4)))
    return wb


@functools.partial(jax.jit, static_argnames=("num_heads", "window_size",
                                              "single_buffer", "tuning"))
def _encoder_forward(x, params, *, num_heads, window_size, single_buffer, tuning):
    vmem_limit, target_rows = tuning
    xc = patch_embed_forward(x, params["patch_w"], params["patch_b"],
                             vmem_limit, target_rows, single_buffer)
    b, d, h, w, c = xc.shape
    wd, wh, ww = window_size
    needs_pad = bool((d % wd) or (h % wh) or (w % ww))

    # window-token layout built once and kept for the whole encoder (bf16)
    xw = partition_windows(xc, window_size)                           # (NW, N, C)
    mask = None
    if needs_pad:
        mask = partition_windows(jnp.ones((b, d, h, w, 1), jnp.float32),
                                 window_size)                         # (NW, N, 1)
    nw, n, _ = xw.shape
    hidden = params["stages"][0][0]["fc1_w"].shape[1]
    wb = _choose_window_batch(nw, n, c, hidden, max(num_heads),
                              target_rows, vmem_limit)
    nw_pad = _round_up(nw, wb)
    if nw_pad != nw:
        xw = jnp.pad(xw, ((0, nw_pad - nw), (0, 0), (0, 0)))
        if mask is not None:
            mask = jnp.pad(mask, ((0, nw_pad - nw), (0, 0), (0, 0)))

    features = []
    for si, stage in enumerate(params["stages"]):
        for blk in stage:
            xw = swin_block_pallas(xw, mask, blk, num_heads[si], wb,
                                   vmem_limit, single_buffer)
        feat = reverse_windows(xw[:nw].astype(jnp.float32),
                               window_size, b, d, h, w)               # (B,D,H,W,C)
        features.append(jnp.transpose(feat, (0, 4, 1, 2, 3)))         # (B,C,D,H,W)
    return features


def encoder_forward(x, params, *, num_heads, window_size):
    return _encoder_forward(
        x, params,
        num_heads=tuple(num_heads), window_size=tuple(window_size),
        single_buffer=_single_buffer_weights_supported(),
        tuning=_hw_tuning())


# ----------------------------- parameters -----------------------------

def init_params(key, in_channels, embed_dim, depths, mlp_ratio):
    """Raw (PyTorch-layout) f32 parameters."""
    keys = iter(jax.random.split(key, 256))

    def nrm(shape, std=0.02):
        return std * jax.random.normal(next(keys), shape, jnp.float32)

    hidden = int(embed_dim * mlp_ratio)
    params = {
        "patch_w": nrm((embed_dim, in_channels, 4, 4, 4)),
        "patch_b": nrm((embed_dim,), 0.01),
        "stages": [],
    }
    for depth in depths:
        blocks = []
        for _ in range(depth):
            blocks.append(dict(
                ln1_g=jnp.ones((embed_dim,), jnp.float32),
                ln1_b=jnp.zeros((embed_dim,), jnp.float32),
                wqkv=nrm((embed_dim, 3 * embed_dim)),
                bqkv=nrm((3 * embed_dim,), 0.01),
                ln2_g=jnp.ones((embed_dim,), jnp.float32),
                ln2_b=jnp.zeros((embed_dim,), jnp.float32),
                fc1_w=nrm((embed_dim, hidden)),
                fc1_b=nrm((hidden,), 0.01),
                fc2_w=nrm((hidden, embed_dim)),
                fc2_b=nrm((embed_dim,), 0.01),
                gamma1=1e-5 * jnp.ones((embed_dim,), jnp.float32),
                gamma2=1e-5 * jnp.ones((embed_dim,), jnp.float32),
            ))
        params["stages"].append(blocks)
    return params


def prepare_params(raw, num_heads):
    """One-time parameter prep (outside the forward pass):
       * fold the softmax scale into the Q columns of the QKV projection,
       * flatten the Conv3d patch-embed weight into a (Cin*64, C) matrix,
       * cast matmul weights to bf16 (MXU operands); biases/LN/gamma stay f32,
       * reshape vector params to (1, n) rows for lane-aligned broadcasting."""
    embed = raw["patch_b"].shape[0]
    cin = raw["patch_w"].shape[1]
    prepped = {
        "patch_w": raw["patch_w"].reshape(embed, cin * 64).T.astype(jnp.bfloat16),
        "patch_b": raw["patch_b"].reshape(1, -1),
        "stages": [],
    }
    for si, stage in enumerate(raw["stages"]):
        c = embed
        scale = (c // num_heads[si]) ** (-0.5)
        col = jnp.concatenate([jnp.full((c,), scale, jnp.float32),
                               jnp.ones((2 * c,), jnp.float32)])
        blocks = []
        for blk in stage:
            blocks.append(dict(
                ln1_g=blk["ln1_g"].reshape(1, -1),
                ln1_b=blk["ln1_b"].reshape(1, -1),
                wqkv=(blk["wqkv"] * col[None, :]).astype(jnp.bfloat16),
                bqkv=(blk["bqkv"] * col).reshape(1, -1),
                gamma1=blk["gamma1"].reshape(1, -1),
                ln2_g=blk["ln2_g"].reshape(1, -1),
                ln2_b=blk["ln2_b"].reshape(1, -1),
                fc1_w=blk["fc1_w"].astype(jnp.bfloat16),
                fc1_b=blk["fc1_b"].reshape(1, -1),
                fc2_w=blk["fc2_w"].astype(jnp.bfloat16),
                fc2_b=blk["fc2_b"].reshape(1, -1),
                gamma2=blk["gamma2"].reshape(1, -1),
            ))
        prepped["stages"].append(blocks)
    return prepped


# ----------------------------- main -----------------------------

if __name__ == "__main__":
    # small config consistent with the module's __init__ signature
    in_channels = 2
    embed_dim = 32
    depths = (1, 1)
    num_heads = (2, 2)
    window_size = (4, 4, 4)
    mlp_ratio = 2.0
    input_size = (16, 16, 16)
    batch = 2

    key = jax.random.PRNGKey(0)
    kp, kx = jax.random.split(key)
    raw_params = init_params(kp, in_channels, embed_dim, depths, mlp_ratio)
    params = prepare_params(raw_params, num_heads)
    x = jax.random.normal(kx, (batch, in_channels) + input_size, jnp.float32)

    feats = encoder_forward(x, params, num_heads=num_heads,
                            window_size=window_size)
    for f in feats:
        jax.block_until_ready(f)

    expected = (batch, embed_dim,
                input_size[0] // 4, input_size[1] // 4, input_size[2] // 4)
    assert len(feats) == len(depths)
    assert all(f.shape == expected for f in feats), [f.shape for f in feats]
    assert all(bool(jnp.isfinite(f).all()) for f in feats)
    print("KERNEL_OK")
</pallas_src>

<mosaic_0001>
module attributes {stable_mosaic.version = 11 : i64} {
  func.func @_copy_probe_kernel(%arg0: i32, %arg1: memref<8x128xf32, #tpu.memory_space<vmem>>, %arg2: memref<8x128xf32, #tpu.memory_space<vmem>>) attributes {dimension_semantics = [#tpu.dimension_semantics<arbitrary>], iteration_bounds = array<i64: 2>, scalar_prefetch = 0 : i64, scratch_operands = 0 : i64, tpu.core_type = #tpu.core_type<tc>, window_params = [{pipeline_mode = #tpu.pipeline_mode<synchronous>, transform_indices = @transform_0, window_bounds = array<i64: 8, 128>}, {pipeline_mode = #tpu.pipeline_mode<synchronous>, transform_indices = @transform_1, window_bounds = array<i64: 8, 128>}]} {
    %c0 = arith.constant 0 : index
    %c0_0 = arith.constant 0 : index
    %0 = vector.load %arg1[%c0, %c0_0] : memref<8x128xf32, #tpu.memory_space<vmem>>, vector<8x128xf32>
    %c0_1 = arith.constant 0 : index
    %c0_2 = arith.constant 0 : index
    %1 = vector.load %arg2[%c0_1, %c0_2] : memref<8x128xf32, #tpu.memory_space<vmem>>, vector<8x128xf32>
    tpu.vector_store %arg2[%c0_1, %c0_2], %0 {strides = array<i32>} : memref<8x128xf32, #tpu.memory_space<vmem>>, vector<8x128xf32>,
    return
  }
  func.func @transform_0(%arg0: i32) -> (i32, i32) {
    %c0_i32 = arith.constant 0 : i32
    %c0_i32_0 = arith.constant 0 : i32
    %c0_i32_1 = arith.constant 0 : i32
    return %c0_i32, %c0_i32_0 : i32, i32
  }
  func.func @transform_1(%arg0: i32) -> (i32, i32) {
    %c0_i32 = arith.constant 0 : i32
    %c0_i32_0 = arith.constant 0 : i32
    %c0_i32_1 = arith.constant 0 : i32
    return %c0_i32, %c0_i32_0 : i32, i32
  }
}

module attributes {stable_mosaic.version = 11 : i64} {
  func.func @_patch_linear_kernel(%arg0: i32, %arg1: memref<32x128xbf16, #tpu.memory_space<vmem>>, %arg2: memref<128x32xbf16, #tpu.memory_space<vmem>>, %arg3: memref<1x32xf32, #tpu.memory_space<vmem>>, %arg4: memref<32x32xbf16, #tpu.memory_space<vmem>>) attributes {dimension_semantics = [#tpu.dimension_semantics<parallel>], iteration_bounds = array<i64: 4>, scalar_prefetch = 0 : i64, scratch_operands = 0 : i64, tpu.core_type = #tpu.core_type<tc>, window_params = [{transform_indices = @transform_0, window_bounds = array<i64: 32, 128>}, {pipeline_mode = #tpu.pipeline_mode<synchronous>, transform_indices = @transform_1, window_bounds = array<i64: 128, 32>}, {pipeline_mode = #tpu.pipeline_mode<synchronous>, transform_indices = @transform_2, window_bounds = array<i64: 1, 32>}, {transform_indices = @transform_3, window_bounds = array<i64: 32, 32>}]} {
    %c0 = arith.constant 0 : index
    %c0_0 = arith.constant 0 : index
    %0 = vector.load %arg1[%c0, %c0_0] : memref<32x128xbf16, #tpu.memory_space<vmem>>, vector<32x128xbf16>
    %c0_1 = arith.constant 0 : index
    %c0_2 = arith.constant 0 : index
    %1 = vector.load %arg2[%c0_1, %c0_2] : memref<128x32xbf16, #tpu.memory_space<vmem>>, vector<128x32xbf16>
    %cst = arith.constant dense<0.000000e+00> : vector<32x32xf32>
    %2 = tpu.matmul %0, %1, %cst {dimension_numbers = #tpu.dot_dimension_numbers<[1], [0], [0], [1], [0, 0, 1, 1], [], []>} : vector<32x128xbf16>, vector<128x32xbf16>, vector<32x32xf32> -> vector<32x32xf32>
    %c0_3 = arith.constant 0 : index
    %c0_4 = arith.constant 0 : index
    %3 = vector.load %arg3[%c0_3, %c0_4] : memref<1x32xf32, #tpu.memory_space<vmem>>, vector<1x32xf32>
    %4 = vector.broadcast %3 : vector<1x32xf32> to vector<32x32xf32>
    %5 = arith.addf %2, %4 : vector<32x32xf32>
    %6 = arith.truncf %5 : vector<32x32xf32> to vector<32x32xbf16>
    %c0_5 = arith.constant 0 : index
    %c0_6 = arith.constant 0 : index
    %7 = vector.load %arg4[%c0_5, %c0_6] : memref<32x32xbf16, #tpu.memory_space<vmem>>, vector<32x32xbf16>
    tpu.vector_store %arg4[%c0_5, %c0_6], %6 {strides = array<i32>} : memref<32x32xbf16, #tpu.memory_space<vmem>>, vector<32x32xbf16>,
    return
  }
  func.func @transform_0(%arg0: i32) -> (i32, i32) {
    %c0_i32 = arith.constant 0 : i32
    %c0_i32_0 = arith.constant 0 : i32
    return %arg0, %c0_i32 : i32, i32
  }
  func.func @transform_1(%arg0: i32) -> (i32, i32) {
    %c0_i32 = arith.constant 0 : i32
    %c0_i32_0 = arith.constant 0 : i32
    %c0_i32_1 = arith.constant 0 : i32
    return %c0_i32, %c0_i32_0 : i32, i32
  }
  func.func @transform_2(%arg0: i32) -> (i32, i32) {
    %c0_i32 = arith.constant 0 : i32
    %c0_i32_0 = arith.constant 0 : i32
    %c0_i32_1 = arith.constant 0 : i32
    return %c0_i32, %c0_i32_0 : i32, i32
  }
  func.func @transform_3(%arg0: i32) -> (i32, i32) {
    %c0_i32 = arith.constant 0 : i32
    %c0_i32_0 = arith.constant 0 : i32
    return %arg0, %c0_i32 : i32, i32
  }
}

module attributes {stable_mosaic.version = 11 : i64} {
  func.func @_swin_block_kernel(%arg0: i32, %arg1: memref<1x64x32xbf16, #tpu.memory_space<vmem>>, %arg2: memref<1x32xf32, #tpu.memory_space<vmem>>, %arg3: memref<1x32xf32, #tpu.memory_space<vmem>>, %arg4: memref<32x96xbf16, #tpu.memory_space<vmem>>, %arg5: memref<1x96xf32, #tpu.memory_space<vmem>>, %arg6: memref<1x32xf32, #tpu.memory_space<vmem>>, %arg7: memref<1x32xf32, #tpu.memory_space<vmem>>, %arg8: memref<1x32xf32, #tpu.memory_space<vmem>>, %arg9: memref<32x64xbf16, #tpu.memory_space<vmem>>, %arg10: memref<1x64xf32, #tpu.memory_space<vmem>>, %arg11: memref<64x32xbf16, #tpu.memory_space<vmem>>, %arg12: memref<1x32xf32, #tpu.memory_space<vmem>>, %arg13: memref<1x32xf32, #tpu.memory_space<vmem>>, %arg14: memref<1x64x32xbf16, #tpu.memory_space<vmem>>) attributes {dimension_semantics = [#tpu.dimension_semantics<parallel>], iteration_bounds = array<i64: 2>, scalar_prefetch = 0 : i64, scratch_operands = 0 : i64, tpu.core_type = #tpu.core_type<tc>, window_params = [{transform_indices = @transform_0, window_bounds = array<i64: 1, 64, 32>}, {pipeline_mode = #tpu.pipeline_mode<synchronous>, transform_indices = @transform_1, window_bounds = array<i64: 1, 32>}, {pipeline_mode = #tpu.pipeline_mode<synchronous>, transform_indices = @transform_2, window_bounds = array<i64: 1, 32>}, {pipeline_mode = #tpu.pipeline_mode<synchronous>, transform_indices = @transform_3, window_bounds = array<i64: 32, 96>}, {pipeline_mode = #tpu.pipeline_mode<synchronous>, transform_indices = @transform_4, window_bounds = array<i64: 1, 96>}, {pipeline_mode = #tpu.pipeline_mode<synchronous>, transform_indices = @transform_5, window_bounds = array<i64: 1, 32>}, {pipeline_mode = #tpu.pipeline_mode<synchronous>, transform_indices = @transform_6, window_bounds = array<i64: 1, 32>}, {pipeline_mode = #tpu.pipeline_mode<synchronous>, transform_indices = @transform_7, window_bounds = array<i64: 1, 32>}, {pipeline_mode = #tpu.pipeline_mode<synchronous>, transform_indices = @transform_8, window_bounds = array<i64: 32, 64>}, {pipeline_mode = #tpu.pipeline_mode<synchronous>, transform_indices = @transform_9, window_bounds = array<i64: 1, 64>}, {pipeline_mode = #tpu.pipeline_mode<synchronous>, transform_indices = @transform_10, window_bounds = array<i64: 64, 32>}, {pipeline_mode = #tpu.pipeline_mode<synchronous>, transform_indices = @transform_11, window_bounds = array<i64: 1, 32>}, {pipeline_mode = #tpu.pipeline_mode<synchronous>, transform_indices = @transform_12, window_bounds = array<i64: 1, 32>}, {transform_indices = @transform_13, window_bounds = array<i64: 1, 64, 32>}]} {
    %c0 = arith.constant 0 : index
    %c0_0 = arith.constant 0 : index
    %c0_1 = arith.constant 0 : index
    %0 = vector.load %arg1[%c0, %c0_0, %c0_1] : memref<1x64x32xbf16, #tpu.memory_space<vmem>>, vector<1x64x32xbf16>
    %1 = arith.extf %0 : vector<1x64x32xbf16> to vector<1x64x32xf32>
    %cst = arith.constant dense<0.000000e+00> : vector<1x64xf32>
    %2 = vector.multi_reduction <add>, %1, %cst [2] : vector<1x64x32xf32> to vector<1x64xf32>
    %3 = vector.shape_cast %2 : vector<1x64xf32> to vector<1x64x1xf32>
    %cst_2 = arith.constant 3.200000e+01 : f32
    %4 = vector.broadcast %cst_2 : f32 to vector<1x64x1xf32>
    %5 = arith.divf %3, %4 : vector<1x64x1xf32>
    %6 = vector.broadcast %5 : vector<1x64x1xf32> to vector<1x64x32xf32>
    %7 = arith.subf %1, %6 : vector<1x64x32xf32>
    %8 = arith.mulf %7, %7 : vector<1x64x32xf32>
    %cst_3 = arith.constant dense<0.000000e+00> : vector<1x64xf32>
    %9 = vector.multi_reduction <add>, %8, %cst_3 [2] : vector<1x64x32xf32> to vector<1x64xf32>
    %10 = vector.shape_cast %9 : vector<1x64xf32> to vector<1x64x1xf32>
    %cst_4 = arith.constant 3.200000e+01 : f32
    %11 = vector.broadcast %cst_4 : f32 to vector<1x64x1xf32>
    %12 = arith.divf %10, %11 : vector<1x64x1xf32>
    %13 = vector.broadcast %5 : vector<1x64x1xf32> to vector<1x64x32xf32>
    %14 = arith.subf %1, %13 : vector<1x64x32xf32>
    %cst_5 = arith.constant 9.99999974E-6 : f32
    %15 = vector.broadcast %cst_5 : f32 to vector<1x64x1xf32>
    %16 = arith.addf %12, %15 : vector<1x64x1xf32>
    %17 = math.rsqrt %16 : vector<1x64x1xf32>
    %18 = vector.broadcast %17 : vector<1x64x1xf32> to vector<1x64x32xf32>
    %19 = arith.mulf %14, %18 : vector<1x64x32xf32>
    %c0_6 = arith.constant 0 : index
    %c0_7 = arith.constant 0 : index
    %20 = vector.load %arg2[%c0_6, %c0_7] : memref<1x32xf32, #tpu.memory_space<vmem>>, vector<1x32xf32>
    %21 = vector.shape_cast %20 : vector<1x32xf32> to vector<1x1x32xf32>
    %22 = vector.broadcast %21 : vector<1x1x32xf32> to vector<1x64x32xf32>
    %23 = arith.mulf %19, %22 : vector<1x64x32xf32>
    %c0_8 = arith.constant 0 : index
    %c0_9 = arith.constant 0 : index
    %24 = vector.load %arg3[%c0_8, %c0_9] : memref<1x32xf32, #tpu.memory_space<vmem>>, vector<1x32xf32>
    %25 = vector.shape_cast %24 : vector<1x32xf32> to vector<1x1x32xf32>
    %26 = vector.broadcast %25 : vector<1x1x32xf32> to vector<1x64x32xf32>
    %27 = arith.addf %23, %26 : vector<1x64x32xf32>
    %28 = vector.shape_cast %27 : vector<1x64x32xf32> to vector<64x32xf32>
    %29 = arith.truncf %28 : vector<64x32xf32> to vector<64x32xbf16>
    %c0_10 = arith.constant 0 : index
    %c0_11 = arith.constant 0 : index
    %30 = vector.load %arg4[%c0_10, %c0_11] : memref<32x96xbf16, #tpu.memory_space<vmem>>, vector<32x96xbf16>
    %cst_12 = arith.constant dense<0.000000e+00> : vector<64x96xf32>
    %31 = tpu.matmul %29, %30, %cst_12 {dimension_numbers = #tpu.dot_dimension_numbers<[1], [0], [0], [1], [0, 0, 1, 1], [], []>} : vector<64x32xbf16>, vector<32x96xbf16>, vector<64x96xf32> -> vector<64x96xf32>
    %c0_13 = arith.constant 0 : index
    %c0_14 = arith.constant 0 : index
    %32 = vector.load %arg5[%c0_13, %c0_14] : memref<1x96xf32, #tpu.memory_space<vmem>>, vector<1x96xf32>
    %33 = vector.broadcast %32 : vector<1x96xf32> to vector<64x96xf32>
    %34 = arith.addf %31, %33 : vector<64x96xf32>
    %35 = vector.shape_cast %34 : vector<64x96xf32> to vector<1x64x96xf32>
    %36 = vector.extract_strided_slice %35 {offsets = [0, 0, 0], sizes = [1, 64, 16], strides = [1, 1, 1]} : vector<1x64x96xf32> to vector<1x64x16xf32>
    %37 = arith.truncf %36 : vector<1x64x16xf32> to vector<1x64x16xbf16>
    %38 = vector.extract_strided_slice %35 {offsets = [0, 0, 32], sizes = [1, 64, 16], strides = [1, 1, 1]} : vector<1x64x96xf32> to vector<1x64x16xf32>
    %39 = arith.truncf %38 : vector<1x64x16xf32> to vector<1x64x16xbf16>
    %40 = vector.extract_strided_slice %35 {offsets = [0, 0, 64], sizes = [1, 64, 16], strides = [1, 1, 1]} : vector<1x64x96xf32> to vector<1x64x16xf32>
    %41 = arith.truncf %40 : vector<1x64x16xf32> to vector<1x64x16xbf16>
    "tpu.trace_start"() <{level = 10 : i32, message = "wqd,wkd->wqk"}> : () -> ()
    %cst_15 = arith.constant dense<0.000000e+00> : vector<1x64x64xf32>
    %42 = tpu.matmul %37, %39, %cst_15 {dimension_numbers = #tpu.dot_dimension_numbers<[2], [2], [1], [1], [0, 0, 0, 1, 1, 1], [0], [0]>} : vector<1x64x16xbf16>, vector<1x64x16xbf16>, vector<1x64x64xf32> -> vector<1x64x64xf32>
    "tpu.trace_stop"() : () -> ()
    %cst_16 = arith.constant dense<0xFF800000> : vector<1x64xf32>
    %43 = vector.multi_reduction <maximumf>, %42, %cst_16 [2] : vector<1x64x64xf32> to vector<1x64xf32>
    %44 = vector.shape_cast %43 : vector<1x64xf32> to vector<1x64x1xf32>
    %45 = vector.broadcast %44 : vector<1x64x1xf32> to vector<1x64x64xf32>
    %46 = arith.subf %42, %45 : vector<1x64x64xf32>
    %47 = math.exp %46 : vector<1x64x64xf32>
    %cst_17 = arith.constant dense<0.000000e+00> : vector<1x64xf32>
    %48 = vector.multi_reduction <add>, %47, %cst_17 [2] : vector<1x64x64xf32> to vector<1x64xf32>
    %49 = vector.shape_cast %48 : vector<1x64xf32> to vector<1x64x1xf32>
    %50 = tpu.reciprocal %49 {approx = true} : vector<1x64x1xf32> -> vector<1x64x1xf32>
    %51 = vector.broadcast %50 : vector<1x64x1xf32> to vector<1x64x64xf32>
    %52 = arith.mulf %47, %51 : vector<1x64x64xf32>
    %53 = arith.truncf %52 : vector<1x64x64xf32> to vector<1x64x64xbf16>
    "tpu.trace_start"() <{level = 10 : i32, message = "wqk,wkd->wqd"}> : () -> ()
    %cst_18 = arith.constant dense<0.000000e+00> : vector<1x64x16xf32>
    %54 = tpu.matmul %53, %41, %cst_18 {dimension_numbers = #tpu.dot_dimension_numbers<[2], [1], [1], [2], [0, 0, 0, 1, 1, 2], [0], [0]>} : vector<1x64x64xbf16>, vector<1x64x16xbf16>, vector<1x64x16xf32> -> vector<1x64x16xf32>
    "tpu.trace_stop"() : () -> ()
    %55 = vector.extract_strided_slice %35 {offsets = [0, 0, 16], sizes = [1, 64, 16], strides = [1, 1, 1]} : vector<1x64x96xf32> to vector<1x64x16xf32>
    %56 = arith.truncf %55 : vector<1x64x16xf32> to vector<1x64x16xbf16>
    %57 = vector.extract_strided_slice %35 {offsets = [0, 0, 48], sizes = [1, 64, 16], strides = [1, 1, 1]} : vector<1x64x96xf32> to vector<1x64x16xf32>
    %58 = arith.truncf %57 : vector<1x64x16xf32> to vector<1x64x16xbf16>
    %59 = vector.extract_strided_slice %35 {offsets = [0, 0, 80], sizes = [1, 64, 16], strides = [1, 1, 1]} : vector<1x64x96xf32> to vector<1x64x16xf32>
    %60 = arith.truncf %59 : vector<1x64x16xf32> to vector<1x64x16xbf16>
    "tpu.trace_start"() <{level = 10 : i32, message = "wqd,wkd->wqk"}> : () -> ()
    %cst_19 = arith.constant dense<0.000000e+00> : vector<1x64x64xf32>
    %61 = tpu.matmul %56, %58, %cst_19 {dimension_numbers = #tpu.dot_dimension_numbers<[2], [2], [1], [1], [0, 0, 0, 1, 1, 1], [0], [0]>} : vector<1x64x16xbf16>, vector<1x64x16xbf16>, vector<1x64x64xf32> -> vector<1x64x64xf32>
    "tpu.trace_stop"() : () -> ()
    %cst_20 = arith.constant dense<0xFF800000> : vector<1x64xf32>
    %62 = vector.multi_reduction <maximumf>, %61, %cst_20 [2] : vector<1x64x64xf32> to vector<1x64xf32>
    %63 = vector.shape_cast %62 : vector<1x64xf32> to vector<1x64x1xf32>
    %64 = vector.broadcast %63 : vector<1x64x1xf32> to vector<1x64x64xf32>
    %65 = arith.subf %61, %64 : vector<1x64x64xf32>
    %66 = math.exp %65 : vector<1x64x64xf32>
    %cst_21 = arith.constant dense<0.000000e+00> : vector<1x64xf32>
    %67 = vector.multi_reduction <add>, %66, %cst_21 [2] : vector<1x64x64xf32> to vector<1x64xf32>
    %68 = vector.shape_cast %67 : vector<1x64xf32> to vector<1x64x1xf32>
    %69 = tpu.reciprocal %68 {approx = true} : vector<1x64x1xf32> -> vector<1x64x1xf32>
    %70 = vector.broadcast %69 : vector<1x64x1xf32> to vector<1x64x64xf32>
    %71 = arith.mulf %66, %70 : vector<1x64x64xf32>
    %72 = arith.truncf %71 : vector<1x64x64xf32> to vector<1x64x64xbf16>
    "tpu.trace_start"() <{level = 10 : i32, message = "wqk,wkd->wqd"}> : () -> ()
    %cst_22 = arith.constant dense<0.000000e+00> : vector<1x64x16xf32>
    %73 = tpu.matmul %72, %60, %cst_22 {dimension_numbers = #tpu.dot_dimension_numbers<[2], [1], [1], [2], [0, 0, 0, 1, 1, 2], [0], [0]>} : vector<1x64x64xbf16>, vector<1x64x16xbf16>, vector<1x64x16xf32> -> vector<1x64x16xf32>
    "tpu.trace_stop"() : () -> ()
    %74 = tpu.concatenate %54, %73 in 2 : vector<1x64x16xf32>, vector<1x64x16xf32> -> vector<1x64x32xf32>
    %c0_23 = arith.constant 0 : index
    %c0_24 = arith.constant 0 : index
    %75 = vector.load %arg6[%c0_23, %c0_24] : memref<1x32xf32, #tpu.memory_space<vmem>>, vector<1x32xf32>
    %76 = vector.shape_cast %75 : vector<1x32xf32> to vector<1x1x32xf32>
    %77 = vector.broadcast %76 : vector<1x1x32xf32> to vector<1x64x32xf32>
    %78 = arith.mulf %77, %74 : vector<1x64x32xf32>
    %79 = arith.addf %1, %78 : vector<1x64x32xf32>
    %80 = vector.shape_cast %79 : vector<1x64x32xf32> to vector<64x32xf32>
    %cst_25 = arith.constant dense<0.000000e+00> : vector<64xf32>
    %81 = vector.multi_reduction <add>, %80, %cst_25 [1] : vector<64x32xf32> to vector<64xf32>
    %82 = vector.shape_cast %81 : vector<64xf32> to vector<64x1xf32>
    %cst_26 = arith.constant 3.200000e+01 : f32
    %83 = vector.broadcast %cst_26 : f32 to vector<64x1xf32>
    %84 = arith.divf %82, %83 : vector<64x1xf32>
    %85 = vector.broadcast %84 : vector<64x1xf32> to vector<64x32xf32>
    %86 = arith.subf %80, %85 : vector<64x32xf32>
    %87 = arith.mulf %86, %86 : vector<64x32xf32>
    %cst_27 = arith.constant dense<0.000000e+00> : vector<64xf32>
    %88 = vector.multi_reduction <add>, %87, %cst_27 [1] : vector<64x32xf32> to vector<64xf32>
    %89 = vector.shape_cast %88 : vector<64xf32> to vector<64x1xf32>
    %cst_28 = arith.constant 3.200000e+01 : f32
    %90 = vector.broadcast %cst_28 : f32 to vector<64x1xf32>
    %91 = arith.divf %89, %90 : vector<64x1xf32>
    %92 = vector.broadcast %84 : vector<64x1xf32> to vector<64x32xf32>
    %93 = arith.subf %80, %92 : vector<64x32xf32>
    %cst_29 = arith.constant 9.99999974E-6 : f32
    %94 = vector.broadcast %cst_29 : f32 to vector<64x1xf32>
    %95 = arith.addf %91, %94 : vector<64x1xf32>
    %96 = math.rsqrt %95 : vector<64x1xf32>
    %97 = vector.broadcast %96 : vector<64x1xf32> to vector<64x32xf32>
    %98 = arith.mulf %93, %97 : vector<64x32xf32>
    %c0_30 = arith.constant 0 : index
    %c0_31 = arith.constant 0 : index
    %99 = vector.load %arg7[%c0_30, %c0_31] : memref<1x32xf32, #tpu.memory_space<vmem>>, vector<1x32xf32>
    %100 = vector.broadcast %99 : vector<1x32xf32> to vector<64x32xf32>
    %101 = arith.mulf %98, %100 : vector<64x32xf32>
    %c0_32 = arith.constant 0 : index
    %c0_33 = arith.constant 0 : index
    %102 = vector.load %arg8[%c0_32, %c0_33] : memref<1x32xf32, #tpu.memory_space<vmem>>, vector<1x32xf32>
    %103 = vector.broadcast %102 : vector<1x32xf32> to vector<64x32xf32>
    %104 = arith.addf %101, %103 : vector<64x32xf32>
    %105 = arith.truncf %104 : vector<64x32xf32> to vector<64x32xbf16>
    %c0_34 = arith.constant 0 : index
    %c0_35 = arith.constant 0 : index
    %106 = vector.load %arg9[%c0_34, %c0_35] : memref<32x64xbf16, #tpu.memory_space<vmem>>, vector<32x64xbf16>
    %cst_36 = arith.constant dense<0.000000e+00> : vector<64x64xf32>
    %107 = tpu.matmul %105, %106, %cst_36 {dimension_numbers = #tpu.dot_dimension_numbers<[1], [0], [0], [1], [0, 0, 1, 1], [], []>} : vector<64x32xbf16>, vector<32x64xbf16>, vector<64x64xf32> -> vector<64x64xf32>
    %c0_37 = arith.constant 0 : index
    %c0_38 = arith.constant 0 : index
    %108 = vector.load %arg10[%c0_37, %c0_38] : memref<1x64xf32, #tpu.memory_space<vmem>>, vector<1x64xf32>
    %109 = vector.broadcast %108 : vector<1x64xf32> to vector<64x64xf32>
    %110 = arith.addf %107, %109 : vector<64x64xf32>
    %cst_39 = arith.constant 5.000000e-01 : f32
    %111 = vector.broadcast %cst_39 : f32 to vector<64x64xf32>
    %112 = arith.mulf %111, %110 : vector<64x64xf32>
    %cst_40 = arith.constant 0.707106769 : f32
    %113 = vector.broadcast %cst_40 : f32 to vector<64x64xf32>
    %114 = arith.mulf %110, %113 : vector<64x64xf32>
    %115 = math.erf %114 : vector<64x64xf32>
    %cst_41 = arith.constant 1.000000e+00 : f32
    %116 = vector.broadcast %cst_41 : f32 to vector<64x64xf32>
    %117 = arith.addf %116, %115 : vector<64x64xf32>
    %118 = arith.mulf %112, %117 : vector<64x64xf32>
    %119 = arith.truncf %118 : vector<64x64xf32> to vector<64x64xbf16>
    %c0_42 = arith.constant 0 : index
    %c0_43 = arith.constant 0 : index
    %120 = vector.load %arg11[%c0_42, %c0_43] : memref<64x32xbf16, #tpu.memory_space<vmem>>, vector<64x32xbf16>
    %cst_44 = arith.constant dense<0.000000e+00> : vector<64x32xf32>
    %121 = tpu.matmul %119, %120, %cst_44 {dimension_numbers = #tpu.dot_dimension_numbers<[1], [0], [0], [1], [0, 0, 1, 1], [], []>} : vector<64x64xbf16>, vector<64x32xbf16>, vector<64x32xf32> -> vector<64x32xf32>
    %c0_45 = arith.constant 0 : index
    %c0_46 = arith.constant 0 : index
    %122 = vector.load %arg12[%c0_45, %c0_46] : memref<1x32xf32, #tpu.memory_space<vmem>>, vector<1x32xf32>
    %123 = vector.broadcast %122 : vector<1x32xf32> to vector<64x32xf32>
    %124 = arith.addf %121, %123 : vector<64x32xf32>
    %c0_47 = arith.constant 0 : index
    %c0_48 = arith.constant 0 : index
    %125 = vector.load %arg13[%c0_47, %c0_48] : memref<1x32xf32, #tpu.memory_space<vmem>>, vector<1x32xf32>
    %126 = vector.broadcast %125 : vector<1x32xf32> to vector<64x32xf32>
    %127 = arith.mulf %126, %124 : vector<64x32xf32>
    %128 = arith.addf %80, %127 : vector<64x32xf32>
    %129 = vector.shape_cast %128 : vector<64x32xf32> to vector<1x64x32xf32>
    %130 = arith.truncf %129 : vector<1x64x32xf32> to vector<1x64x32xbf16>
    %c0_49 = arith.constant 0 : index
    %c0_50 = arith.constant 0 : index
    %c0_51 = arith.constant 0 : index
    %131 = vector.load %arg14[%c0_49, %c0_50, %c0_51] : memref<1x64x32xbf16, #tpu.memory_space<vmem>>, vector<1x64x32xbf16>
    tpu.vector_store %arg14[%c0_49, %c0_50, %c0_51], %130 {strides = array<i32>} : memref<1x64x32xbf16, #tpu.memory_space<vmem>>, vector<1x64x32xbf16>,
    return
  }
  func.func @transform_0(%arg0: i32) -> (i32, i32, i32) {
    %c0_i32 = arith.constant 0 : i32
    %c0_i32_0 = arith.constant 0 : i32
    %c0_i32_1 = arith.constant 0 : i32
    return %arg0, %c0_i32, %c0_i32_0 : i32, i32, i32
  }
  func.func @transform_1(%arg0: i32) -> (i32, i32) {
    %c0_i32 = arith.constant 0 : i32
    %c0_i32_0 = arith.constant 0 : i32
    %c0_i32_1 = arith.constant 0 : i32
    return %c0_i32, %c0_i32_0 : i32, i32
  }
  func.func @transform_2(%arg0: i32) -> (i32, i32) {
    %c0_i32 = arith.constant 0 : i32
    %c0_i32_0 = arith.constant 0 : i32
    %c0_i32_1 = arith.constant 0 : i32
    return %c0_i32, %c0_i32_0 : i32, i32
  }
  func.func @transform_3(%arg0: i32) -> (i32, i32) {
    %c0_i32 = arith.constant 0 : i32
    %c0_i32_0 = arith.constant 0 : i32
    %c0_i32_1 = arith.constant 0 : i32
    return %c0_i32, %c0_i32_0 : i32, i32
  }
  func.func @transform_4(%arg0: i32) -> (i32, i32) {
    %c0_i32 = arith.constant 0 : i32
    %c0_i32_0 = arith.constant 0 : i32
    %c0_i32_1 = arith.constant 0 : i32
    return %c0_i32, %c0_i32_0 : i32, i32
  }
  func.func @transform_5(%arg0: i32) -> (i32, i32) {
    %c0_i32 = arith.constant 0 : i32
    %c0_i32_0 = arith.constant 0 : i32
    %c0_i32_1 = arith.constant 0 : i32
    return %c0_i32, %c0_i32_0 : i32, i32
  }
  func.func @transform_6(%arg0: i32) -> (i32, i32) {
    %c0_i32 = arith.constant 0 : i32
    %c0_i32_0 = arith.constant 0 : i32
    %c0_i32_1 = arith.constant 0 : i32
    return %c0_i32, %c0_i32_0 : i32, i32
  }
  func.func @transform_7(%arg0: i32) -> (i32, i32) {
    %c0_i32 = arith.constant 0 : i32
    %c0_i32_0 = arith.constant 0 : i32
    %c0_i32_1 = arith.constant 0 : i32
    return %c0_i32, %c0_i32_0 : i32, i32
  }
  func.func @transform_8(%arg0: i32) -> (i32, i32) {
    %c0_i32 = arith.constant 0 : i32
    %c0_i32_0 = arith.constant 0 : i32
    %c0_i32_1 = arith.constant 0 : i32
    return %c0_i32, %c0_i32_0 : i32, i32
  }
  func.func @transform_9(%arg0: i32) -> (i32, i32) {
    %c0_i32 = arith.constant 0 : i32
    %c0_i32_0 = arith.constant 0 : i32
    %c0_i32_1 = arith.constant 0 : i32
    return %c0_i32, %c0_i32_0 : i32, i32
  }
  func.func @transform_10(%arg0: i32) -> (i32, i32) {
    %c0_i32 = arith.constant 0 : i32
    %c0_i32_0 = arith.constant 0 : i32
    %c0_i32_1 = arith.constant 0 : i32
    return %c0_i32, %c0_i32_0 : i32, i32
  }
  func.func @transform_11(%arg0: i32) -> (i32, i32) {
    %c0_i32 = arith.constant 0 : i32
    %c0_i32_0 = arith.constant 0 : i32
    %c0_i32_1 = arith.constant 0 : i32
    return %c0_i32, %c0_i32_0 : i32, i32
  }
  func.func @transform_12(%arg0: i32) -> (i32, i32) {
    %c0_i32 = arith.constant 0 : i32
    %c0_i32_0 = arith.constant 0 : i32
    %c0_i32_1 = arith.constant 0 : i32
    return %c0_i32, %c0_i32_0 : i32, i32
  }
  func.func @transform_13(%arg0: i32) -> (i32, i32, i32) {
    %c0_i32 = arith.constant 0 : i32
    %c0_i32_0 = arith.constant 0 : i32
    %c0_i32_1 = arith.constant 0 : i32
    return %arg0, %c0_i32, %c0_i32_0 : i32, i32, i32
  }
}

</mosaic_0001>

<bundles_post_ra>
// kernel: tpu_custom_call.1
= control target key start
LH: loop header
LB: loop body
LE: loop exit
PB: predicated region body
PF: predicated region fallthrough
CT: control target
= control target key end

     0   :  { %6 = vsyncpa [#allocation3], 0  ;;  %s304_s0 = inlined_call_operand.hbm [shape: f32[8,128], index: 0, kind: input, shape index: {}]   ;;  %s305_s1 = inlined_call_operand.hbm [shape: f32[8,128], index: 1, kind: output, shape index: {}]  }
   0x1   :  { %7 = vsyncpa [#allocation4], 0  ;;  %s257_s6 = smov 0  }
   0x2 LB: > { %s144_s7 = sadd.s32 4294967295, %s243_s6   ;;  %p145_p0 = scmp.ge.s32.totalorder %s243_s6, 1  ;;  %s243_s6 = sphi %s257_s6, %s13_s6  }
   0x3   : > { %p60_p1 = scmp.lt.s32.totalorder %s243_s6, 3  ;;  %p269_p3 = scmp.eq.s32.totalorder %s144_s7, 0 }
   0x4   : > { %s245_s10 = smov [#allocation2]  }
   0x5   : > { %p265_p2 = pnand %p145_p0, %p60_p1  ;;  %s73_s11 = sshll.u32 %s245_s10, 4  ;;  %s74_s11 = int_to_ptr.vmem [resolvable:$true] %s73_s11 }
   0x6   : > { %s190_s12 = scalar_lea.vmem %s74_s11, 128  ;;  %p198_p10 = scmp.lt.s32.totalorder %s74_s11, %s74_s11 }
   0x7   : > { %p161_p4 = pneg %p265_p2  ;;  %p191_p7 = scmp.ne.s32.totalorder %s74_s11, %s190_s12 }
   0x8   : > { %p199_p11 = scmp.lt.s32.totalorder %s190_s12, %s190_s12 }
   0x9   : > { %p162_p5 = pnand %p269_p3, %p161_p4 }
   0xa   : > { %p200_p12 = por %p199_p11, %p198_p10 }
   0xb   : > { %p181_p6 = pneg %p162_p5 }
   0xd   : > { %p193_p8 = pnand %p191_p7, %p181_p6 }
   0xf   : > { %p194_p9 = pneg %p193_p8 }
  0x11   : > { %p201_p13 = pnand %p200_p12, %p194_p9 }
  0x13   : > { %204 = shalt.err (!%p201_p13)
}
  0x14   : > { %164 = dma.hbm_to_vmem [thread:$0]  (!%p162_p5), %s304_s0, 128, %s74_s11, [#allocation3]  }
  0x15   : > { %86 = sbr.rel (%p265_p2) target bundleno = 42 (0x2a), region = 24 }
  0x1a   : > { %234 = dma.done.wait (%p269_p3), [#allocation3], 128  }
  0x1b   : > { %236 = vsyncadd (%p269_p3), [#allocation3], 4294967168  ;;  %s246_s15 = smov [#allocation5]   ;;  %p286_p0 = scmp.eq.s32.totalorder %s144_s7, 1  ;;  %v96_v0 = vld [vmem:[#allocation2] sm:$0xff] }
  0x1c   : > { %s105_s16 = sshll.u32 %s246_s15, 4  ;;  %97 = vst [vmem:[#allocation5] sm:$0xff] %v96_v0  ;;  %s106_s16 = int_to_ptr.vmem [resolvable:$true] %s105_s16 }
  0x1d   : > { %s205_s18 = scalar_lea.vmem %s106_s16, 128  ;;  %p212_p5 = scmp.lt.s32.totalorder %s106_s16, %s106_s16 }
  0x1e   : > { %p206_p1 = scmp.ne.s32.totalorder %s106_s16, %s205_s18  ;;  %p213_p6 = scmp.lt.s32.totalorder %s205_s18, %s205_s18 }
  0x20   : > { %p207_p2 = pnand %p206_p1, %p286_p0  ;;  %p214_p7 = por %p213_p6, %p212_p5 }
  0x22   : > { %p208_p4 = pneg %p207_p2 }
  0x24   : > { %p215_p8 = pnand %p214_p7, %p208_p4 }
  0x26   : > { %218 = shalt.err (!%p215_p8)
}
  0x27   : > { %158 = dma.vmem_to_hbm [thread:$0]  (%p286_p0), %s106_s16, 128, %s305_s1, [#allocation4]  }
  0x28   : > { %238 = dma.done.wait (%p286_p0), [#allocation4], 128  }
  0x29   : > { %240 = vsyncadd (%p286_p0), [#allocation4], 4294967168 }
  0x2a PF: > { %s13_s6 = sadd.s32 1, %s243_s6  }
  0x2b   : > { %p10_p3 = scmp.ge.s32.totalorder %s13_s6, 4  }
  0x2d   :  { %12 = sbr.rel (!%p10_p3) target bundleno = 2 (0x2), region = 53 }
  0x32   :  { %118 = vsyncpa [#allocation3], 1 }
  0x33   :  { %120 = vsyncpa [#allocation3 + $0x1], 1 }
  0x34   :  { %121 = vsyncpa [#allocation4], 1 }
  0x35   :  { %123 = vsyncpa [#allocation4 + $0x1], 1 }

// kernel: _encoder_forward.3
= control target key start
LH: loop header
LB: loop body
LE: loop exit
PB: predicated region body
PF: predicated region fallthrough
CT: control target
= control target key end

     0   :  { %s494_s12 = smov 0   ;;  %s541_s0 = inlined_call_operand.vmem [shape: bf16[128,128], index: 0, kind: input, shape index: {}]   ;;  %s542_s1 = inlined_call_operand.vmem [shape: bf16[128,32], index: 1, kind: input, shape index: {}]   ;;  %s543_s2 = inlined_call_operand.vmem [shape: f32[1,32], index: 2, kind: input, shape index: {}]   ;;  %s544_s3 = inlined_call_operand.vmem [shape: bf16[128,32], index: 3, kind: output, shape index: {}]  }
   0x1 LB: > { %s388_s13 = sadd.s32 4294967295, %s472_s12   ;;  %p392_p0 = scmp.ge.s32.totalorder %s472_s12, 1  ;;  %s472_s12 = sphi %s494_s12, %s13_s12  }
   0x2   : > { %p138_p1 = scmp.lt.s32.totalorder %s472_s12, 5 }
   0x4   : > { %p139_p2 = pnand %p392_p0, %p138_p1 }
   0x5   : > { %s393_s16 = sshll.u32 (!%p139_p2), %s388_s13, 2 }
   0x6   : > { %142 = sbr.rel (%p139_p2) target bundleno = 248 (0xf8), region = 32  ;;  %p163_p3 = scmp.lt.s32.totalorder (!%p139_p2), %s393_s16, 15 }
   0xb   : > { %v456_v0 = vld [vmem:[%s542_s1 + $0x38] sm:$0xff]   ;;  %v457_v1 = vld [vmem:[%s542_s1 + $0x30] sm:$0xff]   ;;  %s546_s16 = smov (!%p163_p3, %s393_s16), 15  ;;  %v458_v2 = vld [vmem:[%s542_s1 + $0x28] sm:$0xff]   ;;  %vm327_vm0 = vcmask 257024  }
   0xc   : > { %428 = vmatprep.subr.bf16.mxu0 %v456_v0  ;;  %s394_s21 = sshll.u32 %s546_s16, 2  ;;  %v459_v3 = vld [vmem:[%s542_s1 + $0x20] sm:$0xff]   ;;  %v460_v5 = vld [vmem:[%s542_s1 + $0x18] sm:$0xff]   ;;  %v461_v6 = vld [vmem:[%s542_s1 + $0x10] sm:$0xff]  }
   0xd   : > { %429 = vmatpush3.bf16.msra.mxu0 %v456_v0  ;;  %s166_s24 = scalar_lea.vmem %s541_s0, %s394_s21  ;;  %v462_v7 = vld [vmem:[%s542_s1 + $0x8] sm:$0xff]   ;;  %v463_v8 = vld [vmem:[%s542_s1] sm:$0xff]   ;;  %s172_s13 = scalar_lea.vmem %s544_s3, %s394_s21 }
   0xe   : > { %430 = vmatprep.subr.bf16.mxu0 %v457_v1  ;;  %v464_v4 = vld [vmem:[%s166_s24] sm:$0xff]   ;;  %v465_v9 = vld [vmem:[%s166_s24 + $0x8] sm:$0xff]  }
   0xf   : > { %444 = vmatprep.mubr.bf16.mxu0 %v464_v4  ;;  %v397_v10 = vld [vmem:[%s543_s2] ss:$0 sm:$0xff] }
  0x11   : > { %431 = vmatpush3.bf16.msra.mxu0 %v457_v1 }
  0x12   : > { %432 = vmatprep.subr.bf16.mxu0 %v458_v2 }
  0x15   : > { %433 = vmatpush3.bf16.msra.mxu0 %v458_v2 }
  0x16   : > { %434 = vmatprep.subr.bf16.mxu0 %v459_v3 }
  0x19   : > { %435 = vmatpush3.bf16.msra.mxu0 %v459_v3 }
  0x1a   : > { %436 = vmatprep.subr.bf16.mxu0 %v460_v5 }
  0x1d   : > { %437 = vmatpush3.bf16.msra.mxu0 %v460_v5 }
  0x1e   : > { %438 = vmatprep.subr.bf16.mxu0 %v461_v6 }
  0x21   : > { %439 = vmatpush3.bf16.msra.mxu0 %v461_v6 }
  0x22   : > { %440 = vmatprep.subr.bf16.mxu0 %v462_v7 }
  0x25   : > { %441 = vmatpush3.bf16.msra.mxu0 %v462_v7 }
  0x26   : > { %442 = vmatprep.subr.bf16.mxu0 %v463_v8 }
  0x29   : > { %443 = vmatpush3.bf16.msra.mxu0 %v463_v8 }
  0x2c   : > { %445 = vmatmul.mubr.bf16.vlgmr.msra.gmra.mxu0 %v465_v9 }
  0xec   : > { %v446_v11 = vpop.f32.mrf.mxu0 }
  0xed   : > { %v305_v12 = vadd.f32 %v446_v11, %v397_v10 }
  0xee   : > { %v296_v13 = vpop.f32.mrf.mxu0 }
  0xef   : > { %v416_v14 = vpack.c.bf16 %v305_v12, %v305_v12  ;;  %v297_v15 = vadd.f32 %v397_v10, %v296_v13 }
  0xf0   : > { %v447_v16 = vpop.f32.mrf.mxu0 }
  0xf1   : > { %330 = vst.msk [vmem:[%s172_s13 + $0x8] sm:$0xf] %vm327_vm0, %v416_v14  ;;  %v414_v17 = vpack.c.bf16 %v297_v15, %v297_v15  ;;  %v308_v18 = vadd.f32 %v447_v16, %v397_v10 }
  0xf2   : > { %v299_v19 = vpop.f32.mrf.mxu0 }
  0xf3   : > { %328 = vst.msk [vmem:[%s172_s13] sm:$0xf] %vm327_vm0, %v414_v17  ;;  %v417_v20 = vpack.c.bf16 %v308_v18, %v308_v18  ;;  %v300_v21 = vadd.f32 %v397_v10, %v299_v19 }
  0xf5   : > { %331 = vst.msk [vmem:[%s172_s13 + $0xc] sm:$0xf] %vm327_vm0, %v417_v20  ;;  %v415_v22 = vpack.c.bf16 %v300_v21, %v300_v21 }
  0xf7   : > { %329 = vst.msk [vmem:[%s172_s13 + $0x4] sm:$0xf] %vm327_vm0, %v415_v22 }
  0xf8 PF: > { %s13_s12 = sadd.s32 1, %s472_s12  }
  0xf9   : > { %p10_p4 = scmp.ge.s32.totalorder %s13_s12, 6  }
  0xfb   :  { %12 = sbr.rel (!%p10_p4) target bundleno = 1 (0x1), region = 62 }

// kernel: _encoder_forward.4
= control target key start
LH: loop header
LB: loop body
LE: loop exit
PB: predicated region body
PF: predicated region fallthrough
CT: control target
= control target key end

     0   :  { %s2327_s25 = smov 0   ;;  %s2776_s0 = inlined_call_operand.vmem [shape: bf16[2,64,32], index: 0, kind: input, shape index: {}]   ;;  %s2777_s1 = inlined_call_operand.vmem [shape: f32[1,32], index: 1, kind: input, shape index: {}]   ;;  %s2778_s2 = inlined_call_operand.vmem [shape: f32[1,32], index: 2, kind: input, shape index: {}]   ;;  %s2779_s3 = inlined_call_operand.vmem [shape: bf16[32,96], index: 3, kind: input, shape index: {}]   ;;  %s2780_s4 = inlined_call_operand.vmem [shape: f32[1,96], index: 4, kind: input, shape index: {}]   ;;  %s2781_s5 = inlined_call_operand.vmem [shape: f32[1,32], index: 5, kind: input, shape index: {}]   ;;  %s2782_s6 = inlined_call_operand.vmem [shape: f32[1,32], index: 6, kind: input, shape index: {}]   ;;  %s2783_s7 = inlined_call_operand.vmem [shape: f32[1,32], index: 7, kind: input, shape index: {}]   ;;  %s2784_s8 = inlined_call_operand.vmem [shape: bf16[32,64], index: 8, kind: input, shape index: {}]   ;;  %s2785_s9 = inlined_call_operand.vmem [shape: f32[1,64], index: 9, kind: input, shape index: {}]   ;;  %s2786_s10 = inlined_call_operand.vmem [shape: bf16[64,32], index: 10, kind: input, shape index: {}]   ;;  %s2787_s11 = inlined_call_operand.vmem [shape: f32[1,32], index: 11, kind: input, shape index: {}]   ;;  %s2788_s12 = inlined_call_operand.vmem [shape: f32[1,32], index: 12, kind: input, shape index: {}]   ;;  %s2789_s13 = inlined_call_operand.vmem [shape: bf16[2,64,32], index: 13, kind: output, shape index: {}]  }
   0x1 LB: > { %s1852_s26 = sadd.s32 4294967295, %s2249_s25   ;;  %p1856_p0 = scmp.ge.s32.totalorder %s2249_s25, 1  ;;  %s2249_s25 = sphi %s2327_s25, %s23_s25  }
   0x2   : > { %p387_p1 = scmp.lt.s32.totalorder %s2249_s25, 3 }
   0x4   : > { %p388_p2 = pnand %p1856_p0, %p387_p1 }
   0x5   : > { %p431_p3 = scmp.lt.s32.totalorder (!%p388_p2), %s1852_s26, 1  ;;  %s2251_s24 = smov (!%p388_p2), 96  }
   0x6   : > { %391 = sbr.rel (%p388_p2) target bundleno = 2893 (0xb4d), region = 72  ;;  %s2252_s28 = smov (!%p388_p2), 64  }
   0x7   : > { %s2253_s29 = smov (!%p388_p2), 80   ;;  %s2255_s14 = smov (!%p388_p2), 48  }
   0x8   : > { %s2256_s15 = smov (!%p388_p2), 16  }
   0xb   : > { %s2791_s26 = smov (!%p431_p3, %s1852_s26), 1  ;;  %vm458_vm0 = vcmask 261120   ;;  %v2123_v60 = vld [vmem:[%s2779_s3 + $0x8] sm:$0xff]   ;;  %v2124_v61 = vld [vmem:[%s2779_s3] sm:$0xff]   ;;  %vm714_vm1 = vcmask 130048   ;;  %vm804_vm2 = vcmask 523264  }
   0xc   : > { %s1916_s27 = sshll.u32 %s2791_s26, 5  ;;  %1997 = vmatprep.subr.bf16.mxu0 %v2123_v60  ;;  %vm1788_vm3 = vcmask 257024  }
   0xd   : > { %s435_s30 = scalar_lea.vmem %s2776_s0, %s1916_s27  ;;  %1998 = vmatpush3.bf16.msra.mxu0 %v2123_v60 }
   0xe   : > { %v1927_v0 = vld [vmem:[%s435_s30] sm:$0xff]   ;;  %v1942_v1 = vld [vmem:[%s435_s30 + $0x8] sm:$0xff]   ;;  %v1943_v6 = vld [vmem:[%s435_s30 + $0x10] sm:$0xff]   ;;  %1999 = vmatprep.subr.bf16.mxu0 %v2124_v61 }
   0xf   : > { %v2343_v2 = vunpack.c.l.bf16 %v1927_v0  ;;  %v2345_v3 = vunpack.c.l.bf16 %v1942_v1  ;;  %v2347_v4 = vunpack.c.h.bf16 %v1927_v0  ;;  %v2349_v5 = vunpack.c.h.bf16 %v1942_v1  ;;  %v1944_v13 = vld [vmem:[%s435_s30 + $0x18] sm:$0xff]   ;;  %s2254_s30 = smov 112  }
  0x10   : > { %v2359_v11 = vunpack.c.l.bf16 %v1943_v6  ;;  %v2361_v12 = vunpack.c.h.bf16 %v1943_v6  ;;  %v2367_v16 = vunpack.c.l.bf16 %v1944_v13  ;;  %v2369_v17 = vunpack.c.h.bf16 %v1944_v13 }
  0x11   : > { %v459_v7 = vsel %vm458_vm0, %v2343_v2, 0.0  ;;  %v465_v8 = vsel %vm458_vm0, %v2345_v3, 0.0  ;;  %v462_v9 = vsel %vm458_vm0, %v2347_v4, 0.0  ;;  %v468_v10 = vsel %vm458_vm0, %v2349_v5, 0.0  ;;  %2000 = vmatpush3.bf16.msra.mxu0 %v2124_v61 }
  0x12   : > { %460 = vadd.xlane.f32.xlu0 %v459_v7  ;;  %466 = vadd.xlane.f32.xlu1 %v465_v8  ;;  %v471_v14 = vsel %vm458_vm0, %v2359_v11, 0.0  ;;  %v474_v15 = vsel %vm458_vm0, %v2361_v12, 0.0  ;;  %v477_v18 = vsel %vm458_vm0, %v2367_v16, 0.0  ;;  %v480_v19 = vsel %vm458_vm0, %v2369_v17, 0.0 }
  0x16   : > { %463 = vadd.xlane.f32.xlu0 %v462_v9  ;;  %469 = vadd.xlane.f32.xlu1 %v468_v10 }
  0x1a   : > { %472 = vadd.xlane.f32.xlu0 %v471_v14  ;;  %475 = vadd.xlane.f32.xlu1 %v474_v15 }
  0x1e   : > { %478 = vadd.xlane.f32.xlu0 %v477_v18  ;;  %481 = vadd.xlane.f32.xlu1 %v480_v19 }
  0x9b   : > { %v461_v20 = vpop.xlane.xlu0 %460  ;;  %v467_v21 = vpop.xlane.xlu1 %466 }
  0x9c   : > { %v484_v22 = vmul.f32 0.03125, %v461_v20  ;;  %v486_v23 = vmul.f32 0.03125, %v467_v21 }
  0x9e   : > { %v2376_v24 = vsub.f32 %v2343_v2, %v484_v22  ;;  %v2379_v25 = vsub.f32 %v2345_v3, %v486_v23 }
  0x9f   : > { %v464_v26 = vpop.xlane.xlu0 %463  ;;  %v470_v27 = vpop.xlane.xlu1 %469 }
  0xa0   : > { %v485_v28 = vmul.f32 0.03125, %v464_v26  ;;  %v487_v29 = vmul.f32 0.03125, %v470_v27  ;;  %v500_v30 = vmul.f32 %v2376_v24, %v2376_v24  ;;  %v502_v31 = vmul.f32 %v2379_v25, %v2379_v25 }
  0xa2   : > { %v2386_v32 = vsub.f32 %v2347_v4, %v485_v28  ;;  %v2389_v33 = vsub.f32 %v2349_v5, %v487_v29  ;;  %v508_v34 = vsel %vm458_vm0, %v500_v30, 0.0  ;;  %v514_v37 = vsel %vm458_vm0, %v502_v31, 0.0 }
  0xa3   : > { %509 = vadd.xlane.f32.xlu0 %v508_v34  ;;  %v473_v35 = vpop.xlane.xlu0 %472  ;;  %v476_v36 = vpop.xlane.xlu1 %475 }
  0xa4   : > { %v488_v38 = vmul.f32 0.03125, %v473_v35  ;;  %v489_v39 = vmul.f32 0.03125, %v476_v36  ;;  %v501_v40 = vmul.f32 %v2386_v32, %v2386_v32  ;;  %v503_v41 = vmul.f32 %v2389_v33, %v2389_v33  ;;  %v1861_v36 = vld [vmem:[%s2777_s1] ss:$0 sm:$0xff] }
  0xa6   : > { %v2398_v42 = vsub.f32 %v2359_v11, %v488_v38  ;;  %v2401_v43 = vsub.f32 %v2361_v12, %v489_v39  ;;  %v511_v44 = vsel %vm458_vm0, %v501_v40, 0.0  ;;  %v517_v47 = vsel %vm458_vm0, %v503_v41, 0.0  ;;  %v1862_v41 = vld [vmem:[%s2778_s2] ss:$0 sm:$0xff] }
  0xa7   : > { %515 = vadd.xlane.f32.xlu0 %v514_v37  ;;  %512 = vadd.xlane.f32.xlu1 %v511_v44  ;;  %v479_v45 = vpop.xlane.xlu0 %478  ;;  %v482_v46 = vpop.xlane.xlu1 %481 }
  0xa8   : > { %v490_v48 = vmul.f32 0.03125, %v479_v45  ;;  %v491_v49 = vmul.f32 0.03125, %v482_v46  ;;  %v504_v50 = vmul.f32 %v2398_v42, %v2398_v42  ;;  %v505_v51 = vmul.f32 %v2401_v43, %v2401_v43 }
  0xaa   : > { %v2410_v52 = vsub.f32 %v2367_v16, %v490_v48  ;;  %v2413_v53 = vsub.f32 %v2369_v17, %v491_v49  ;;  %v520_v54 = vsel %vm458_vm0, %v504_v50, 0.0  ;;  %v523_v55 = vsel %vm458_vm0, %v505_v51, 0.0 }
  0xab   : > { %518 = vadd.xlane.f32.xlu1 %v517_v47  ;;  %521 = vadd.xlane.f32.xlu0 %v520_v54 }
  0xac   : > { %v506_v56 = vmul.f32 %v2410_v52, %v2410_v52  ;;  %v507_v57 = vmul.f32 %v2413_v53, %v2413_v53 }
  0xae   : > { %v526_v58 = vsel %vm458_vm0, %v506_v56, 0.0  ;;  %v529_v59 = vsel %vm458_vm0, %v507_v57, 0.0 }
  0xaf   : > { %524 = vadd.xlane.f32.xlu1 %v523_v55  ;;  %527 = vadd.xlane.f32.xlu0 %v526_v58 }
  0xb3   : > { %530 = vadd.xlane.f32.xlu1 %v529_v59 }
 0x12c   : > { %v510_v62 = vpop.xlane.xlu0 %509 }
 0x12d   : > { %v532_v63 = vmul.f32 0.03125, %v510_v62 }
 0x12f   : > { %v540_v0 = vadd.f32 1e-05, %v532_v63 }
 0x130   : > { %v513_v1 = vpop.xlane.xlu1 %512  ;;  %v516_v6 = vpop.xlane.xlu0 %515 }
 0x131   : > { %2131 = vrsqrt.f32 %v540_v0  ;;  %v533_v7 = vmul.f32 0.03125, %v513_v1  ;;  %v534_v8 = vmul.f32 0.03125, %v516_v6 }
 0x133   : > { %v541_v9 = vadd.f32 1e-05, %v533_v7  ;;  %v542_v10 = vadd.f32 1e-05, %v534_v8 }
 0x134   : > { %v519_v13 = vpop.xlane.xlu1 %518  ;;  %v522_v14 = vpop.xlane.xlu0 %521 }
 0x135   : > { %2133 = vrsqrt.f32 %v541_v9  ;;  %v535_v15 = vmul.f32 0.03125, %v519_v13  ;;  %v536_v18 = vmul.f32 0.03125, %v522_v14  ;;  %v1863_v14 = vld [vmem:[%s2780_s4] ss:$0 sm:$0xff] }
 0x136   : > { %2135 = vrsqrt.f32 %v542_v10 }
 0x137   : > { %v543_v19 = vadd.f32 1e-05, %v535_v15  ;;  %v544_v20 = vadd.f32 1e-05, %v536_v18 }
 0x138   : > { %v525_v21 = vpop.xlane.xlu1 %524  ;;  %v528_v22 = vpop.xlane.xlu0 %527 }
 0x139   : > { %2137 = vrsqrt.f32 %v543_v19  ;;  %v537_v23 = vmul.f32 0.03125, %v525_v21  ;;  %v538_v26 = vmul.f32 0.03125, %v528_v22 }
 0x13a   : > { %2139 = vrsqrt.f32 %v544_v20 }
 0x13b   : > { %v545_v27 = vadd.f32 1e-05, %v537_v23  ;;  %v546_v28 = vadd.f32 1e-05, %v538_v26 }
 0x13c   : > { %v531_v29 = vpop.xlane.xlu1 %530 }
 0x13d   : > { %2141 = vrsqrt.f32 %v545_v27  ;;  %v539_v30 = vmul.f32 0.03125, %v531_v29 }
 0x13e   : > { %v2132_v31 = vpop.eup %2131  ;;  %2143 = vrsqrt.f32 %v546_v28 }
 0x13f   : > { %v547_v34 = vadd.f32 1e-05, %v539_v30  ;;  %v556_v35 = vmul.f32 %v2132_v31, %v2376_v24 }
 0x141   : > { %2145 = vrsqrt.f32 %v547_v34  ;;  %v571_v40 = vmul.f32 %v1861_v36, %v556_v35 }
 0x142   : > { %v2134_v37 = vpop.eup %2133 }
 0x143   : > { %v2136_v38 = vpop.eup %2135  ;;  %v557_v39 = vmul.f32 %v2134_v37, %v2386_v32  ;;  %v586_v24 = vadd.f32 %v1862_v41, %v571_v40 }
 0x144   : > { %v558_v44 = vmul.f32 %v2136_v38, %v2379_v25 }
 0x145   : > { %v572_v45 = vmul.f32 %v1861_v36, %v557_v39 }
 0x146   : > { %v2138_v46 = vpop.eup %2137  ;;  %v573_v50 = vmul.f32 %v1861_v36, %v558_v44 }
 0x147   : > { %v2140_v47 = vpop.eup %2139  ;;  %v587_v48 = vadd.f32 %v1862_v41, %v572_v45  ;;  %v559_v49 = vmul.f32 %v2138_v46, %v2389_v33 }
 0x148   : > { %v560_v51 = vmul.f32 %v2140_v47, %v2398_v42  ;;  %v588_v57 = vadd.f32 %v1862_v41, %v573_v50 }
 0x149   : > { %v594_v54 = vpack.c.bf16 %v587_v48, %v586_v24  ;;  %v574_v55 = vmul.f32 %v1861_v36, %v559_v49 }
 0x14a   : > { %v2142_v32 = vpop.eup %2141  ;;  %v575_v59 = vmul.f32 %v1861_v36, %v560_v51 }
 0x14b   : > { %v2144_v56 = vpop.eup %2143  ;;  %2001 = vmatprep.mubr.msk.bf16.mxu0 %vm458_vm0, %v594_v54  ;;  %v589_v58 = vadd.f32 %v1862_v41, %v574_v55  ;;  %v561_v25 = vmul.f32 %v2142_v32, %v2401_v43 }
 0x14c   : > { %v562_v60 = vmul.f32 %v2144_v56, %v2410_v52  ;;  %v590_v33 = vadd.f32 %v1862_v41, %v575_v59 }
 0x14d   : > { %v595_v61 = vpack.c.bf16 %v589_v58, %v588_v57  ;;  %v576_v62 = vmul.f32 %v1861_v36, %v561_v25 }
 0x14e   : > { %v2146_v63 = vpop.eup %2145  ;;  %v577_v1 = vmul.f32 %v1861_v36, %v562_v60 }
 0x14f   : > { %2002 = vmatmul.mubr.msk.bf16.vlgmr.msra.gmra.mxu0 %vm458_vm0, %v595_v61  ;;  %v591_v42 = vadd.f32 %v1862_v41, %v576_v62  ;;  %v563_v0 = vmul.f32 %v2146_v63, %v2413_v53 }
 0x150   : > { %v592_v8 = vadd.f32 %v1862_v41, %v577_v1 }
 0x151   : > { %v596_v6 = vpack.c.bf16 %v591_v42, %v590_v33  ;;  %v578_v7 = vmul.f32 %v1861_v36, %v563_v0 }
 0x153   : > { %2005 = vmatprep.mubr.msk.bf16.mxu0 %vm458_vm0, %v596_v6  ;;  %v593_v9 = vadd.f32 %v1862_v41, %v578_v7 }
 0x155   : > { %v597_v43 = vpack.c.bf16 %v593_v9, %v592_v8 }
 0x157   : > { %2006 = vmatmul.mubr.msk.bf16.gmra.mxu0 %vm458_vm0, %v597_v43 }
 0x20f   : > { %v2003_v52 = vpop.f32.mrf.mxu0 }
 0x210   : > { %v676_v35 = vadd.f32 %v2003_v52, %v1863_v14 }
 0x211   : > { %v667_v10 = vpop.f32.mrf.mxu0 }
 0x212   : > { %v668_v18 = vadd.f32 %v1863_v14, %v667_v10 }
 0x213   : > { %v2004_v13 = vpop.f32.mrf.mxu0 }
 0x214   : > { %v679_v31 = vadd.f32 %v2004_v13, %v1863_v14 }
 0x215   : > { %v670_v15 = vpop.f32.mrf.mxu0 }
 0x216   : > { %v671_v53 = vadd.f32 %v1863_v14, %v670_v15  ;;  %v2460_v36 = vpack.c.bf16 %v679_v31, %v676_v35 }
 0x217   : > { %v2007_v19 = vpop.f32.mrf.mxu0 }
 0x218   : > { %v2450_v20 = vpack.c.bf16 %v671_v53, %v668_v18  ;;  %v692_v23 = vadd.f32 %v2007_v19, %v1863_v14 }
 0x219   : > { %v683_v21 = vpop.f32.mrf.mxu0 }
 0x21a   : > { %2017 = vmatprep.mubr.msk.bf16.mxu1 %vm714_vm1, %v2450_v20  ;;  %v684_v28 = vadd.f32 %v1863_v14, %v683_v21 }
 0x21b   : > { %v2008_v22 = vpop.f32.mrf.mxu0 }
 0x21c   : > { %v695_v26 = vadd.f32 %v2008_v22, %v1863_v14 }
 0x21d   : > { %v686_v27 = vpop.f32.mrf.mxu0 }
 0x21e   : > { %v2454_v29 = vpack.c.bf16 %v695_v26, %v692_v23  ;;  %v687_v30 = vadd.f32 %v1863_v14, %v686_v27 }
 0x220   : > { %v2456_v34 = vpack.c.bf16 %v687_v30, %v684_v28  ;;  %712 = vrot.lane.b32.xlu0 %v2454_v29, %s2251_s24 }
 0x222   : > { %710 = vrot.lane.b32.xlu1 %v2456_v34, %s2251_s24 }
 0x226   : > { %708 = vrot.lane.b32.xlu1 %v2460_v36, %s2251_s24 }
 0x22a   : > { %706 = vrot.lane.b32.xlu1 %v2450_v20, %s2251_s24 }
 0x292   : > { %v713_v37 = vpop.permute.xlu0 %712 }
 0x293   : > { %2101 = vmatprep.subr.msk.bf16.mxu1 %vm714_vm1, %v713_v37  ;;  %v737_v38 = vsel %vm714_vm1, %v713_v37, 0 }
 0x294   : > { %2010 = vmatpush3.bf16.xpose.msra.mxu1 %v737_v38  ;;  %v711_v39 = vpop.permute.xlu1 %710 }
 0x295   : > { %2102 = vmatprep.subr.msk.bf16.mxu1 %vm714_vm1, %v711_v39  ;;  %v734_v40 = vsel %vm714_vm1, %v711_v39, 0 }
 0x298   : > { %v709_v41 = vpop.permute.xlu1 %708 }
 0x299   : > { %v731_v44 = vsel %vm714_vm1, %v709_v41, 0 }
 0x29c   : > { %2012 = vmatpush3.bf16.xpose.msra.mxu1 %v734_v40  ;;  %v707_v45 = vpop.permute.xlu1 %706 }
 0x29d   : > { %2103 = vmatprep.subr.msk.bf16.mxu1 %vm714_vm1, %v709_v41  ;;  %v728_v46 = vsel %vm714_vm1, %v707_v45, 0 }
 0x2a4   : > { %2014 = vmatpush3.bf16.xpose.msra.mxu1 %v731_v44 }
 0x2a5   : > { %2104 = vmatprep.subr.msk.bf16.mxu1 %vm714_vm1, %v707_v45 }
 0x2ac   : > { %2016 = vmatpush3.bf16.xpose.msra.mxu1 %v728_v46 }
 0x2b3   : > { %2018 = vmatmul.mubr.msk.bf16.vlgmr.msra.gmra.mxu1 %vm714_vm1, %v2460_v36 }
 0x2b4   : > { %2021 = vmatprep.mubr.msk.bf16.mxu1 %vm714_vm1, %v2456_v34 }
 0x2bb   : > { %2022 = vmatmul.mubr.msk.bf16.gmra.mxu1 %vm714_vm1, %v2454_v29 }
 0x373   : > { %v2019_v47 = vpop.f32.mrf.mxu1 }
 0x374   : > { %v811_v51 = vsel %vm804_vm2, %v2019_v47, -inf }
 0x375   : > { %v773_v24 = vpop.f32.mrf.mxu1 }
 0x376   : > { %v805_v48 = vsel %vm804_vm2, %v773_v24, -inf }
 0x377   : > { %806 = vmax.xlane.f32.xlu0 %v805_v48  ;;  %v2020_v49 = vpop.f32.mrf.mxu1 }
 0x378   : > { %v814_v56 = vsel %vm804_vm2, %v2020_v49, -inf }
 0x379   : > { %v776_v50 = vpop.f32.mrf.mxu1 }
 0x37a   : > { %v808_v54 = vsel %vm804_vm2, %v776_v50, -inf }
 0x37b   : > { %812 = vmax.xlane.f32.xlu0 %v811_v51  ;;  %809 = vmax.xlane.f32.xlu1 %v808_v54  ;;  %v2023_v55 = vpop.f32.mrf.mxu1 }
 0x37c   : > { %v823_v59 = vsel %vm804_vm2, %v2023_v55, -inf }
 0x37d   : > { %v789_v32 = vpop.f32.mrf.mxu1 }
 0x37e   : > { %v817_v61 = vsel %vm804_vm2, %v789_v32, -inf }
 0x37f   : > { %815 = vmax.xlane.f32.xlu0 %v814_v56  ;;  %v2024_v57 = vpop.f32.mrf.mxu1 }
 0x380   : > { %v826_v58 = vsel %vm804_vm2, %v2024_v57, -inf }
 0x381   : > { %827 = vmax.xlane.f32.xlu1 %v826_v58  ;;  %v792_v25 = vpop.f32.mrf.mxu1 }
 0x382   : > { %v820_v60 = vsel %vm804_vm2, %v792_v25, -inf }
 0x383   : > { %824 = vmax.xlane.f32.xlu0 %v823_v59 }
 0x385   : > { %821 = vmax.xlane.f32.xlu1 %v820_v60 }
 0x387   : > { %818 = vmax.xlane.f32.xlu0 %v817_v61 }
 0x396   : > { %901 = vrot.lane.b32.xlu1 %v2456_v34, %s2252_s28 }
 0x39a   : > { %899 = vrot.lane.b32.xlu1 %v2460_v36, %s2252_s28 }
 0x39d   : > { %903 = vrot.lane.b32.xlu0 %v2454_v29, %s2252_s28 }
 0x39e   : > { %897 = vrot.lane.b32.xlu1 %v2450_v20, %s2252_s28 }
 0x400   : > { %v807_v62 = vpop.xlane.xlu0 %806 }
 0x401   : > { %v829_v63 = vsub.f32 %v773_v24, %v807_v62 }
 0x403   : > { %v837_v1 = vmul.f32 1.442695, %v829_v63 }
 0x404   : > { %v813_v33 = vpop.xlane.xlu0 %812  ;;  %v810_v42 = vpop.xlane.xlu1 %809 }
 0x405   : > { %v831_v0 = vsub.f32 %v2019_v47, %v813_v33  ;;  %v830_v7 = vsub.f32 %v776_v50, %v810_v42 }
 0x407   : > { %v841_v6 = vmul.f32 1.442695, %v831_v0  ;;  %v839_v52 = vmul.f32 1.442695, %v830_v7 }
 0x408   : > { %v816_v8 = vpop.xlane.xlu0 %815 }
 0x409   : > { %2147 = vpow2.f32 %v841_v6  ;;  %v832_v9 = vsub.f32 %v2020_v49, %v816_v8 }
 0x40a   : > { %v828_v43 = vpop.xlane.xlu1 %827  ;;  %2149 = vpow2.f32 %v837_v1 }
 0x40b   : > { %v843_v10 = vmul.f32 1.442695, %v832_v9  ;;  %v836_v13 = vsub.f32 %v2024_v57, %v828_v43 }
 0x40c   : > { %v825_v14 = vpop.xlane.xlu0 %824 }
 0x40d   : > { %2151 = vpow2.f32 %v843_v10  ;;  %v835_v15 = vsub.f32 %v2023_v55, %v825_v14  ;;  %v851_v53 = vmul.f32 1.442695, %v836_v13 }
 0x40e   : > { %v822_v18 = vpop.xlane.xlu1 %821  ;;  %2153 = vpow2.f32 %v839_v52 }
 0x40f   : > { %v849_v19 = vmul.f32 1.442695, %v835_v15  ;;  %v834_v21 = vsub.f32 %v792_v25, %v822_v18 }
 0x410   : > { %v819_v22 = vpop.xlane.xlu0 %818 }
 0x411   : > { %2155 = vpow2.f32 %v849_v19  ;;  %v833_v23 = vsub.f32 %v789_v32, %v819_v22  ;;  %v847_v27 = vmul.f32 1.442695, %v834_v21 }
 0x412   : > { %v902_v26 = vpop.permute.xlu1 %901  ;;  %2157 = vpow2.f32 %v851_v53 }
 0x413   : > { %v845_v28 = vmul.f32 1.442695, %v833_v23 }
 0x414   : > { %v904_v30 = vpop.permute.xlu0 %903 }
 0x415   : > { %2159 = vpow2.f32 %v845_v28  ;;  %2025 = vmatprep.subr.bf16.mxu0 %v904_v30 }
 0x416   : > { %v2490_v31 = vpop.eup %2147  ;;  %2026 = vmatpush3.bf16.msra.mxu0 %v904_v30  ;;  %2161 = vpow2.f32 %v847_v27  ;;  %v900_v38 = vpop.permute.xlu1 %899 }
 0x417   : > { %2027 = vmatprep.subr.bf16.mxu0 %v902_v26  ;;  %v859_v35 = vsel %vm804_vm2, %v2490_v31, 0.0  ;;  %v2150_v37 = vpop.eup %2149 }
 0x418   : > { %860 = vadd.xlane.f32.xlu0 %v859_v35  ;;  %v853_v40 = vsel %vm804_vm2, %v2150_v37, 0.0 }
 0x41a   : > { %v2152_v39 = vpop.eup %2151  ;;  %2028 = vmatpush3.bf16.msra.mxu0 %v902_v26  ;;  %v898_v46 = vpop.permute.xlu1 %897 }
 0x41b   : > { %2029 = vmatprep.subr.bf16.mxu0 %v900_v38  ;;  %v862_v41 = vsel %vm804_vm2, %v2152_v39, 0.0  ;;  %v2154_v44 = vpop.eup %2153 }
 0x41c   : > { %854 = vadd.xlane.f32.xlu0 %v853_v40  ;;  %863 = vadd.xlane.f32.xlu1 %v862_v41  ;;  %v856_v24 = vsel %vm804_vm2, %v2154_v44, 0.0 }
 0x41e   : > { %v2496_v45 = vpop.eup %2155  ;;  %2030 = vmatpush3.bf16.msra.mxu0 %v900_v38 }
 0x41f   : > { %2031 = vmatprep.subr.bf16.mxu0 %v898_v46  ;;  %v871_v47 = vsel %vm804_vm2, %v2496_v45, 0.0  ;;  %v2158_v48 = vpop.eup %2157 }
 0x420   : > { %872 = vadd.xlane.f32.xlu0 %v871_v47  ;;  %857 = vadd.xlane.f32.xlu1 %v856_v24  ;;  %v874_v50 = vsel %vm804_vm2, %v2158_v48, 0.0 }
 0x422   : > { %v2160_v49 = vpop.eup %2159  ;;  %2032 = vmatpush3.bf16.msra.mxu0 %v898_v46 }
 0x423   : > { %v865_v51 = vsel %vm804_vm2, %v2160_v49, 0.0  ;;  %v2162_v54 = vpop.eup %2161 }
 0x424   : > { %875 = vadd.xlane.f32.xlu0 %v874_v50  ;;  %866 = vadd.xlane.f32.xlu1 %v865_v51  ;;  %v868_v55 = vsel %vm804_vm2, %v2162_v54, 0.0 }
 0x428   : > { %869 = vadd.xlane.f32.xlu0 %v868_v55 }
 0x435   : > { %998 = vrot.lane.b32.xlu1 %v2456_v34, %s2253_s29 }
 0x439   : > { %996 = vrot.lane.b32.xlu1 %v2460_v36, %s2253_s29 }
 0x43d   : > { %994 = vrot.lane.b32.xlu1 %v2450_v20, %s2253_s29 }
 0x43e   : > { %1000 = vrot.lane.b32.xlu0 %v2454_v29, %s2253_s29 }
 0x441   : > { %988 = vrot.lane.b32.xlu1 %v2460_v36, %s2254_s30 }
 0x442   : > { %986 = vrot.lane.b32.xlu0 %v2450_v20, %s2254_s30 }
 0x445   : > { %992 = vrot.lane.b32.xlu1 %v2454_v29, %s2254_s30 }
 0x446   : > { %990 = vrot.lane.b32.xlu0 %v2456_v34, %s2254_s30 }
 0x4a1   : > { %v861_v32 = vpop.xlane.xlu0 %860 }
 0x4a5   : > { %v855_v56 = vpop.xlane.xlu0 %854  ;;  %v864_v57 = vpop.xlane.xlu1 %863 }
 0x4a6   : > { %2163 = vrcp.f32 %v864_v57 }
 0x4a7   : > { %2165 = vrcp.f32 %v855_v56 }
 0x4a8   : > { %2167 = vrcp.f32 %v861_v32 }
 0x4a9   : > { %v873_v58 = vpop.xlane.xlu0 %872  ;;  %v858_v25 = vpop.xlane.xlu1 %857 }
 0x4aa   : > { %2169 = vrcp.f32 %v858_v25 }
 0x4ad   : > { %v876_v59 = vpop.xlane.xlu0 %875  ;;  %v867_v60 = vpop.xlane.xlu1 %866 }
 0x4ae   : > { %2171 = vrcp.f32 %v876_v59 }
 0x4af   : > { %2173 = vrcp.f32 %v867_v60 }
 0x4b0   : > { %2175 = vrcp.f32 %v873_v58 }
 0x4b1   : > { %v870_v61 = vpop.xlane.xlu0 %869  ;;  %v999_v18 = vpop.permute.xlu1 %998 }
 0x4b2   : > { %2177 = vrcp.f32 %v870_v61  ;;  %v1021_v27 = vsel %vm714_vm1, %v999_v18, 0 }
 0x4b3   : > { %v2164_v62 = vpop.eup %2163 }
 0x4b4   : > { %v2166_v33 = vpop.eup %2165  ;;  %v888_v1 = vmul.f32 %v2164_v62, %v2152_v39 }
 0x4b5   : > { %v1001_v63 = vpop.permute.xlu0 %1000  ;;  %v2168_v42 = vpop.eup %2167  ;;  %v885_v6 = vmul.f32 %v2166_v33, %v2150_v37 }
 0x4b6   : > { %2105 = vmatprep.subr.msk.bf16.mxu0 %vm714_vm1, %v1001_v63  ;;  %v887_v8 = vmul.f32 %v2168_v42, %v2490_v31  ;;  %v1024_v14 = vsel %vm714_vm1, %v1001_v63, 0  ;;  %v997_v30 = vpop.permute.xlu1 %996 }
 0x4b7   : > { %v2170_v0 = vpop.eup %2169  ;;  %v1018_v31 = vsel %vm714_vm1, %v997_v30, 0 }
 0x4b8   : > { %v886_v7 = vmul.f32 %v2170_v0, %v2154_v44  ;;  %v894_v52 = vpack.c.bf16 %v888_v1, %v887_v8 }
 0x4b9   : > { %v987_v28 = vpop.permute.xlu0 %986 }
 0x4ba   : > { %v893_v9 = vpack.c.bf16 %v886_v7, %v885_v6  ;;  %v995_v35 = vpop.permute.xlu1 %994 }
 0x4bb   : > { %v2172_v43 = vpop.eup %2171  ;;  %v1015_v37 = vsel %vm714_vm1, %v995_v35, 0 }
 0x4bc   : > { %v2174_v10 = vpop.eup %2173  ;;  %2033 = vmatprep.mubr.msk.bf16.mxu0 %vm804_vm2, %v893_v9  ;;  %v892_v21 = vmul.f32 %v2172_v43, %v2158_v48 }
 0x4bd   : > { %v2176_v13 = vpop.eup %2175  ;;  %2034 = vmatmul.mubr.msk.bf16.vlgmr.msra.gmra.mxu0 %vm804_vm2, %v894_v52  ;;  %v889_v53 = vmul.f32 %v2174_v10, %v2160_v49  ;;  %v991_v39 = vpop.permute.xlu0 %990 }
 0x4be   : > { %2042 = vmatpush3.bf16.xpose.msra.mxu0 %v1024_v14  ;;  %v891_v23 = vmul.f32 %v2176_v13, %v2496_v45  ;;  %v989_v38 = vpop.permute.xlu1 %988 }
 0x4bf   : > { %v2178_v15 = vpop.eup %2177  ;;  %2106 = vmatprep.subr.msk.bf16.mxu0 %vm714_vm1, %v999_v18 }
 0x4c0   : > { %v890_v19 = vmul.f32 %v2178_v15, %v2162_v54  ;;  %v896_v26 = vpack.c.bf16 %v892_v21, %v891_v23 }
 0x4c2   : > { %v895_v22 = vpack.c.bf16 %v890_v19, %v889_v53  ;;  %v993_v40 = vpop.permute.xlu1 %992 }
 0x4c4   : > { %2037 = vmatprep.mubr.msk.bf16.mxu0 %vm804_vm2, %v895_v22 }
 0x4c5   : > { %2038 = vmatmul.mubr.msk.bf16.gmra.mxu0 %vm804_vm2, %v896_v26 }
 0x4c6   : > { %2044 = vmatpush3.bf16.xpose.msra.mxu0 %v1021_v27  ;;  %2049 = vmatprep.mubr.msk.bf16.mxu0 %vm714_vm1, %v987_v28 }
 0x4c7   : > { %2107 = vmatprep.subr.msk.bf16.mxu0 %vm714_vm1, %v997_v30 }
 0x4ce   : > { %2046 = vmatpush3.bf16.xpose.msra.mxu0 %v1018_v31 }
 0x4cf   : > { %2108 = vmatprep.subr.msk.bf16.mxu0 %vm714_vm1, %v995_v35 }
 0x4d6   : > { %2048 = vmatpush3.bf16.xpose.msra.mxu0 %v1015_v37 }
 0x4dd   : > { %2050 = vmatmul.mubr.msk.bf16.vlgmr.msra.gmra.mxu0 %vm714_vm1, %v989_v38 }
 0x4de   : > { %2053 = vmatprep.mubr.msk.bf16.mxu0 %vm714_vm1, %v991_v39 }
 0x4e5   : > { %2054 = vmatmul.mubr.msk.bf16.gmra.mxu0 %vm714_vm1, %v993_v40 }
 0x57d   : > { %v2530_v41 = vpop.f32.mrf.mxu0 }
 0x57f   : > { %v2532_v44 = vpop.f32.mrf.mxu0 }
 0x581   : > { %v2534_v45 = vpop.f32.mrf.mxu0 }
 0x583   : > { %v2536_v46 = vpop.f32.mrf.mxu0 }
 0x585   : > { %v2538_v47 = vpop.f32.mrf.mxu0 }
 0x587   : > { %v2540_v24 = vpop.f32.mrf.mxu0 }
 0x589   : > { %v2542_v48 = vpop.f32.mrf.mxu0 }
 0x58b   : > { %v2544_v49 = vpop.f32.mrf.mxu0 }
 0x59d   : > { %v2051_v50 = vpop.f32.mrf.mxu0 }
 0x59e   : > { %v1097_v56 = vsel %vm804_vm2, %v2051_v50, -inf }
 0x59f   : > { %v1060_v51 = vpop.f32.mrf.mxu0 }
 0x5a0   : > { %v1091_v54 = vsel %vm804_vm2, %v1060_v51, -inf }
 0x5a1   : > { %1092 = vmax.xlane.f32.xlu0 %v1091_v54  ;;  %v2052_v55 = vpop.f32.mrf.mxu0 }
 0x5a2   : > { %v1100_v59 = vsel %vm804_vm2, %v2052_v55, -inf }
 0x5a3   : > { %v1063_v32 = vpop.f32.mrf.mxu0 }
 0x5a4   : > { %v1094_v57 = vsel %vm804_vm2, %v1063_v32, -inf }
 0x5a5   : > { %1098 = vmax.xlane.f32.xlu0 %v1097_v56  ;;  %1095 = vmax.xlane.f32.xlu1 %v1094_v57  ;;  %v2055_v58 = vpop.f32.mrf.mxu0 }
 0x5a6   : > { %v1109_v33 = vsel %vm804_vm2, %v2055_v58, -inf }
 0x5a7   : > { %v1076_v25 = vpop.f32.mrf.mxu0 }
 0x5a8   : > { %v1103_v62 = vsel %vm804_vm2, %v1076_v25, -inf }
 0x5a9   : > { %1101 = vmax.xlane.f32.xlu0 %v1100_v59  ;;  %v2056_v60 = vpop.f32.mrf.mxu0 }
 0x5aa   : > { %v1112_v42 = vsel %vm804_vm2, %v2056_v60, -inf }
 0x5ab   : > { %v1079_v61 = vpop.f32.mrf.mxu0 }
 0x5ac   : > { %v1106_v63 = vsel %vm804_vm2, %v1079_v61, -inf }
 0x5ad   : > { %1104 = vmax.xlane.f32.xlu0 %v1103_v62  ;;  %1107 = vmax.xlane.f32.xlu1 %v1106_v63 }
 0x5b1   : > { %1110 = vmax.xlane.f32.xlu0 %v1109_v33  ;;  %1113 = vmax.xlane.f32.xlu1 %v1112_v42 }
 0x62a   : > { %v1093_v0 = vpop.xlane.xlu0 %1092 }
 0x62b   : > { %v1115_v1 = vsub.f32 %v1060_v51, %v1093_v0 }
 0x62d   : > { %v1123_v9 = vmul.f32 1.442695, %v1115_v1 }
 0x62e   : > { %v1099_v6 = vpop.xlane.xlu0 %1098  ;;  %v1096_v7 = vpop.xlane.xlu1 %1095 }
 0x62f   : > { %v1117_v8 = vsub.f32 %v2051_v50, %v1099_v6  ;;  %v1116_v52 = vsub.f32 %v1063_v32, %v1096_v7 }
 0x631   : > { %v1127_v43 = vmul.f32 1.442695, %v1117_v8  ;;  %v1125_v14 = vmul.f32 1.442695, %v1116_v52 }
 0x632   : > { %v1102_v10 = vpop.xlane.xlu0 %1101 }
 0x633   : > { %2179 = vpow2.f32 %v1127_v43  ;;  %v1118_v13 = vsub.f32 %v2052_v55, %v1102_v10 }
 0x634   : > { %2181 = vpow2.f32 %v1123_v9 }
 0x635   : > { %v1129_v15 = vmul.f32 1.442695, %v1118_v13 }
 0x636   : > { %v1105_v18 = vpop.xlane.xlu0 %1104  ;;  %v1108_v54 = vpop.xlane.xlu1 %1107 }
 0x637   : > { %2183 = vpow2.f32 %v1129_v15  ;;  %v1119_v53 = vsub.f32 %v1076_v25, %v1105_v18  ;;  %v1120_v56 = vsub.f32 %v1079_v61, %v1108_v54 }
 0x638   : > { %2185 = vpow2.f32 %v1125_v14 }
 0x639   : > { %v1131_v22 = vmul.f32 1.442695, %v1119_v53 }
 0x63a   : > { %v1111_v19 = vpop.xlane.xlu0 %1110  ;;  %v1114_v55 = vpop.xlane.xlu1 %1113 }
 0x63b   : > { %v1121_v21 = vsub.f32 %v2055_v58, %v1111_v19  ;;  %v1122_v32 = vsub.f32 %v2056_v60, %v1114_v55  ;;  %v1133_v58 = vmul.f32 1.442695, %v1120_v56 }
 0x63d   : > { %v1135_v23 = vmul.f32 1.442695, %v1121_v21  ;;  %v1137_v57 = vmul.f32 1.442695, %v1122_v32  ;;  %v1886_v32 = vld [vmem:[%s2781_s5] ss:$0 sm:$0xff] }
 0x63f   : > { %2187 = vpow2.f32 %v1135_v23 }
 0x640   : > { %v2554_v26 = vpop.eup %2179  ;;  %2189 = vpow2.f32 %v1131_v22 }
 0x641   : > { %v1145_v27 = vsel %vm804_vm2, %v2554_v26, 0.0  ;;  %v2182_v28 = vpop.eup %2181  ;;  %2191 = vpow2.f32 %v1137_v57 }
 0x642   : > { %1146 = vadd.xlane.f32.xlu0 %v1145_v27  ;;  %v1139_v31 = vsel %vm804_vm2, %v2182_v28, 0.0  ;;  %2193 = vpow2.f32 %v1133_v58 }
 0x644   : > { %v2558_v30 = vpop.eup %2183 }
 0x645   : > { %v1148_v35 = vsel %vm804_vm2, %v2558_v30, 0.0  ;;  %v2186_v37 = vpop.eup %2185 }
 0x646   : > { %1140 = vadd.xlane.f32.xlu0 %v1139_v31  ;;  %1149 = vadd.xlane.f32.xlu1 %v1148_v35  ;;  %v1142_v38 = vsel %vm804_vm2, %v2186_v37, 0.0 }
 0x64a   : > { %1143 = vadd.xlane.f32.xlu1 %v1142_v38 }
 0x64c   : > { %v2564_v39 = vpop.eup %2187 }
 0x64d   : > { %v1157_v40 = vsel %vm804_vm2, %v2564_v39, 0.0  ;;  %v2568_v50 = vpop.eup %2189 }
 0x64e   : > { %1158 = vadd.xlane.f32.xlu0 %v1157_v40  ;;  %v1151_v51 = vsel %vm804_vm2, %v2568_v50, 0.0  ;;  %v2192_v25 = vpop.eup %2191 }
 0x64f   : > { %v1160_v59 = vsel %vm804_vm2, %v2192_v25, 0.0  ;;  %v2194_v62 = vpop.eup %2193 }
 0x650   : > { %v1154_v63 = vsel %vm804_vm2, %v2194_v62, 0.0 }
 0x652   : > { %1152 = vadd.xlane.f32.xlu0 %v1151_v51 }
 0x65b   : > { %1187 = vrot.lane.b32.xlu1 %v2456_v34, %s2255_s14 }
 0x65f   : > { %1185 = vrot.lane.b32.xlu1 %v2460_v36, %s2255_s14 }
 0x668   : > { %1189 = vrot.lane.b32.xlu0 %v2454_v29, %s2255_s14 }
 0x683   : > { %1161 = vadd.xlane.f32.xlu1 %v1160_v59 }
 0x687   : > { %1155 = vadd.xlane.f32.xlu1 %v1154_v63 }
 0x698   : > { %1183 = vrot.lane.b32.xlu1 %v2450_v20, %s2255_s14  ;;  %s2748_s14 = scalar_lea.vmem %s2789_s13, %s1916_s27 }
 0x6cb   : > { %v1147_v34 = vpop.xlane.xlu0 %1146 }
 0x6cf   : > { %v1141_v36 = vpop.xlane.xlu0 %1140  ;;  %v1150_v33 = vpop.xlane.xlu1 %1149 }
 0x6d0   : > { %2195 = vrcp.f32 %v1141_v36 }
 0x6d3   : > { %v1144_v29 = vpop.xlane.xlu1 %1143 }
 0x6d4   : > { %2197 = vrcp.f32 %v1144_v29 }
 0x6d5   : > { %2199 = vrcp.f32 %v1150_v33 }
 0x6d6   : > { %2201 = vrcp.f32 %v1147_v34 }
 0x6d7   : > { %v1159_v60 = vpop.xlane.xlu0 %1158  ;;  %v1188_v0 = vpop.permute.xlu1 %1187 }
 0x6db   : > { %v1153_v61 = vpop.xlane.xlu0 %1152  ;;  %v1186_v43 = vpop.permute.xlu1 %1185 }
 0x6dd   : > { %v2196_v42 = vpop.eup %2195 }
 0x6de   : > { %v1171_v7 = vmul.f32 %v2196_v42, %v2182_v28 }
 0x6df   : > { %v1190_v1 = vpop.permute.xlu0 %1189 }
 0x6e0   : > { %2057 = vmatprep.subr.bf16.mxu1 %v1190_v1 }
 0x6e1   : > { %v2198_v6 = vpop.eup %2197  ;;  %2058 = vmatpush3.bf16.msra.mxu1 %v1190_v1 }
 0x6e2   : > { %2059 = vmatprep.subr.bf16.mxu1 %v1188_v0  ;;  %v1172_v8 = vmul.f32 %v2198_v6, %v2186_v37  ;;  %v2200_v52 = vpop.eup %2199 }
 0x6e3   : > { %v2202_v13 = vpop.eup %2201  ;;  %v1174_v14 = vmul.f32 %v2200_v52, %v2558_v30 }
 0x6e4   : > { %v1179_v9 = vpack.c.bf16 %v1172_v8, %v1171_v7  ;;  %v1173_v18 = vmul.f32 %v2202_v13, %v2554_v26 }
 0x6e5   : > { %2060 = vmatpush3.bf16.msra.mxu1 %v1188_v0 }
 0x6e6   : > { %2061 = vmatprep.subr.bf16.mxu1 %v1186_v43  ;;  %2065 = vmatprep.mubr.msk.bf16.mxu1 %vm804_vm2, %v1179_v9  ;;  %v1180_v53 = vpack.c.bf16 %v1174_v14, %v1173_v18 }
 0x6e9   : > { %2062 = vmatpush3.bf16.msra.mxu1 %v1186_v43 }
 0x70c   : > { %v1162_v20 = vpop.xlane.xlu1 %1161 }
 0x70d   : > { %2203 = vrcp.f32 %v1162_v20 }
 0x70e   : > { %2205 = vrcp.f32 %v1153_v61 }
 0x70f   : > { %2207 = vrcp.f32 %v1159_v60 }
 0x710   : > { %v1156_v10 = vpop.xlane.xlu1 %1155 }
 0x711   : > { %2209 = vrcp.f32 %v1156_v10 }
 0x714   : > { %v1184_v15 = vpop.permute.xlu1 %1183 }
 0x715   : > { %2063 = vmatprep.subr.bf16.mxu1 %v1184_v15 }
 0x716   : > { %2064 = vmatpush3.bf16.msra.mxu1 %v1184_v15 }
 0x719   : > { %2066 = vmatmul.mubr.msk.bf16.vlgmr.msra.gmra.mxu1 %vm804_vm2, %v1180_v53 }
 0x71a   : > { %v2204_v19 = vpop.eup %2203 }
 0x71b   : > { %v2206_v21 = vpop.eup %2205  ;;  %v1178_v27 = vmul.f32 %v2204_v19, %v2192_v25 }
 0x71c   : > { %v2208_v22 = vpop.eup %2207  ;;  %v1175_v28 = vmul.f32 %v2206_v21, %v2568_v50 }
 0x71d   : > { %v1177_v35 = vmul.f32 %v2208_v22, %v2564_v39 }
 0x71e   : > { %v2210_v23 = vpop.eup %2209 }
 0x71f   : > { %v1176_v31 = vmul.f32 %v2210_v23, %v2194_v62  ;;  %v1182_v30 = vpack.c.bf16 %v1178_v27, %v1177_v35 }
 0x721   : > { %v1181_v37 = vpack.c.bf16 %v1176_v31, %v1175_v28 }
 0x723   : > { %2069 = vmatprep.mubr.msk.bf16.mxu1 %vm804_vm2, %v1181_v37 }
 0x724   : > { %2070 = vmatmul.mubr.msk.bf16.gmra.mxu1 %vm804_vm2, %v1182_v30 }
 0x7d9   : > { %v2067_v26 = vpop.f32.mrf.mxu1 }
 0x7db   : > { %v1241_v38 = vpop.f32.mrf.mxu1 }
 0x7dc   : > { %1280 = vrot.lane.b32.xlu0 %v1241_v38, %s2256_s15 }
 0x7dd   : > { %v2068_v40 = vpop.f32.mrf.mxu1 }
 0x7df   : > { %v1244_v51 = vpop.f32.mrf.mxu1 }
 0x7e0   : > { %1284 = vrot.lane.b32.xlu0 %v2067_v26, %s2256_s15  ;;  %1282 = vrot.lane.b32.xlu1 %v1244_v51, %s2256_s15 }
 0x7e4   : > { %1286 = vrot.lane.b32.xlu1 %v2068_v40, %s2256_s15  ;;  %v2071_v54 = vpop.f32.mrf.mxu1 }
 0x7e6   : > { %v1257_v50 = vpop.f32.mrf.mxu1 }
 0x7e7   : > { %1288 = vrot.lane.b32.xlu0 %v1257_v50, %s2256_s15 }
 0x7e8   : > { %v2072_v55 = vpop.f32.mrf.mxu1 }
 0x7ea   : > { %v1260_v39 = vpop.f32.mrf.mxu1 }
 0x7eb   : > { %1292 = vrot.lane.b32.xlu0 %v2071_v54, %s2256_s15  ;;  %1290 = vrot.lane.b32.xlu1 %v1260_v39, %s2256_s15 }
 0x7ef   : > { %1294 = vrot.lane.b32.xlu1 %v2072_v55, %s2256_s15 }
 0x84e   : > { %v1281_v56 = vpop.permute.xlu0 %1280 }
 0x84f   : > { %v1304_v57 = vsel %vm714_vm1, %v2532_v44, %v1281_v56 }
 0x850   : > { %v1319_v58 = vmul.f32 %v1886_v32, %v1304_v57 }
 0x852   : > { %v2592_v25 = vadd.f32 %v2343_v2, %v1319_v58  ;;  %v1285_v59 = vpop.permute.xlu0 %1284  ;;  %v1283_v62 = vpop.permute.xlu1 %1282 }
 0x853   : > { %v1306_v63 = vsel %vm714_vm1, %v2530_v41, %v1285_v59  ;;  %v1305_v34 = vsel %vm714_vm1, %v2536_v46, %v1283_v62 }
 0x854   : > { %v1321_v36 = vmul.f32 %v1886_v32, %v1306_v63  ;;  %v1320_v33 = vmul.f32 %v1886_v32, %v1305_v34  ;;  %v1335_v29 = vsel %vm458_vm0, %v2592_v25, 0.0 }
 0x855   : > { %1336 = vadd.xlane.f32.xlu0 %v1335_v29 }
 0x856   : > { %v2601_v44 = vadd.f32 %v2345_v3, %v1321_v36  ;;  %v2604_v2 = vadd.f32 %v2347_v4, %v1320_v33  ;;  %v1287_v60 = vpop.permute.xlu1 %1286 }
 0x857   : > { %v1307_v61 = vsel %vm714_vm1, %v2534_v45, %v1287_v60 }
 0x858   : > { %v1322_v41 = vmul.f32 %v1886_v32, %v1307_v61  ;;  %v1341_v46 = vsel %vm458_vm0, %v2601_v44, 0.0  ;;  %v1338_v42 = vsel %vm458_vm0, %v2604_v2, 0.0 }
 0x859   : > { %1342 = vadd.xlane.f32.xlu0 %v1341_v46  ;;  %v1289_v0 = vpop.permute.xlu0 %1288  ;;  %1339 = vadd.xlane.f32.xlu1 %v1338_v42 }
 0x85a   : > { %v2613_v3 = vadd.f32 %v2349_v5, %v1322_v41  ;;  %v1308_v4 = vsel %vm714_vm1, %v2540_v24, %v1289_v0 }
 0x85b   : > { %v1323_v1 = vmul.f32 %v1886_v32, %v1308_v4  ;;  %v2125_v4 = vld [vmem:[%s2784_s8 + $0x8] sm:$0xff]  }
 0x85c   : > { %v1344_v45 = vsel %vm458_vm0, %v2613_v3, 0.0  ;;  %2073 = vmatprep.subr.bf16.mxu1 %v2125_v4 }
 0x85d   : > { %v2620_v6 = vadd.f32 %v2359_v11, %v1323_v1  ;;  %1345 = vadd.xlane.f32.xlu0 %v1344_v45  ;;  %v1293_v7 = vpop.permute.xlu0 %1292  ;;  %v1291_v8 = vpop.permute.xlu1 %1290  ;;  %2074 = vmatpush3.bf16.msra.mxu1 %v2125_v4  ;;  %v2126_v1 = vld [vmem:[%s2784_s8] sm:$0xff]  }
 0x85e   : > { %v1310_v9 = vsel %vm714_vm1, %v2538_v47, %v1293_v7  ;;  %v1309_v5 = vsel %vm714_vm1, %v2544_v49, %v1291_v8  ;;  %2075 = vmatprep.subr.bf16.mxu1 %v2126_v1 }
 0x85f   : > { %v1325_v43 = vmul.f32 %v1886_v32, %v1310_v9  ;;  %v1324_v20 = vmul.f32 %v1886_v32, %v1309_v5  ;;  %v1347_v24 = vsel %vm458_vm0, %v2620_v6, 0.0 }
 0x861   : > { %v2629_v52 = vadd.f32 %v2367_v16, %v1325_v43  ;;  %v2632_v11 = vadd.f32 %v2361_v12, %v1324_v20  ;;  %1348 = vadd.xlane.f32.xlu0 %v1347_v24  ;;  %v1295_v10 = vpop.permute.xlu1 %1294  ;;  %2076 = vmatpush3.bf16.msra.mxu1 %v2126_v1 }
 0x862   : > { %v1311_v13 = vsel %vm714_vm1, %v2542_v48, %v1295_v10 }
 0x863   : > { %v1326_v47 = vmul.f32 %v1886_v32, %v1311_v13  ;;  %v1350_v49 = vsel %vm458_vm0, %v2632_v11, 0.0  ;;  %v1353_v14 = vsel %vm458_vm0, %v2629_v52, 0.0 }
 0x864   : > { %1351 = vadd.xlane.f32.xlu1 %v1350_v49 }
 0x865   : > { %v2641_v15 = vadd.f32 %v2369_v17, %v1326_v47  ;;  %1354 = vadd.xlane.f32.xlu0 %v1353_v14 }
 0x867   : > { %v1356_v12 = vsel %vm458_vm0, %v2641_v15, 0.0 }
 0x868   : > { %1357 = vadd.xlane.f32.xlu1 %v1356_v12 }
 0x8de   : > { %v1337_v16 = vpop.xlane.xlu0 %1336 }
 0x8df   : > { %v1359_v18 = vmul.f32 0.03125, %v1337_v16 }
 0x8e1   : > { %v2646_v48 = vsub.f32 %v2592_v25, %v1359_v18 }
 0x8e2   : > { %v1343_v53 = vpop.xlane.xlu0 %1342  ;;  %v1340_v19 = vpop.xlane.xlu1 %1339 }
 0x8e3   : > { %v1361_v21 = vmul.f32 0.03125, %v1343_v53  ;;  %v1360_v22 = vmul.f32 0.03125, %v1340_v19  ;;  %v1375_v23 = vmul.f32 %v2646_v48, %v2646_v48 }
 0x8e5   : > { %v2651_v17 = vsub.f32 %v2601_v44, %v1361_v21  ;;  %v2654_v27 = vsub.f32 %v2604_v2, %v1360_v22  ;;  %v1383_v28 = vsel %vm458_vm0, %v1375_v23, 0.0 }
 0x8e6   : > { %1384 = vadd.xlane.f32.xlu0 %v1383_v28  ;;  %v1346_v31 = vpop.xlane.xlu0 %1345 }
 0x8e7   : > { %v1362_v35 = vmul.f32 0.03125, %v1346_v31  ;;  %v1377_v37 = vmul.f32 %v2651_v17, %v2651_v17  ;;  %v1376_v30 = vmul.f32 %v2654_v27, %v2654_v27 }
 0x8e9   : > { %v2662_v26 = vsub.f32 %v2613_v3, %v1362_v35  ;;  %v1389_v38 = vsel %vm458_vm0, %v1377_v37, 0.0  ;;  %v1386_v40 = vsel %vm458_vm0, %v1376_v30, 0.0  ;;  %v1887_v30 = vld [vmem:[%s2782_s6] ss:$0 sm:$0xff] }
 0x8ea   : > { %1390 = vadd.xlane.f32.xlu0 %v1389_v38  ;;  %v1349_v51 = vpop.xlane.xlu0 %1348  ;;  %1387 = vadd.xlane.f32.xlu1 %v1386_v40 }
 0x8eb   : > { %v1363_v54 = vmul.f32 0.03125, %v1349_v51  ;;  %v1378_v50 = vmul.f32 %v2662_v26, %v2662_v26 }
 0x8ed   : > { %v2669_v55 = vsub.f32 %v2620_v6, %v1363_v54  ;;  %v1352_v39 = vpop.xlane.xlu1 %1351  ;;  %v1392_v32 = vsel %vm458_vm0, %v1378_v50, 0.0 }
 0x8ee   : > { %v1364_v56 = vmul.f32 0.03125, %v1352_v39  ;;  %v1355_v57 = vpop.xlane.xlu0 %1354  ;;  %1393 = vadd.xlane.f32.xlu1 %v1392_v32  ;;  %v1888_v32 = vld [vmem:[%s2783_s7] ss:$0 sm:$0xff] }
 0x8ef   : > { %v1365_v58 = vmul.f32 0.03125, %v1355_v57  ;;  %v1379_v59 = vmul.f32 %v2669_v55, %v2669_v55 }
 0x8f0   : > { %v2675_v62 = vsub.f32 %v2632_v11, %v1364_v56 }
 0x8f1   : > { %v2678_v63 = vsub.f32 %v2629_v52, %v1365_v58  ;;  %v1358_v34 = vpop.xlane.xlu1 %1357  ;;  %v1395_v36 = vsel %vm458_vm0, %v1379_v59, 0.0 }
 0x8f2   : > { %v1366_v33 = vmul.f32 0.03125, %v1358_v34  ;;  %1396 = vadd.xlane.f32.xlu0 %v1395_v36  ;;  %v1380_v29 = vmul.f32 %v2675_v62, %v2675_v62 }
 0x8f3   : > { %v1381_v60 = vmul.f32 %v2678_v63, %v2678_v63 }
 0x8f4   : > { %v2686_v61 = vsub.f32 %v2641_v15, %v1366_v33  ;;  %v1398_v41 = vsel %vm458_vm0, %v1380_v29, 0.0 }
 0x8f5   : > { %1399 = vadd.xlane.f32.xlu1 %v1398_v41  ;;  %v1401_v46 = vsel %vm458_vm0, %v1381_v60, 0.0 }
 0x8f6   : > { %1402 = vadd.xlane.f32.xlu0 %v1401_v46  ;;  %v1382_v42 = vmul.f32 %v2686_v61, %v2686_v61 }
 0x8f8   : > { %v1404_v0 = vsel %vm458_vm0, %v1382_v42, 0.0 }
 0x8f9   : > { %1405 = vadd.xlane.f32.xlu1 %v1404_v0 }
 0x96f   : > { %v1385_v45 = vpop.xlane.xlu0 %1384 }
 0x970   : > { %v1407_v7 = vmul.f32 0.03125, %v1385_v45 }
 0x972   : > { %v1415_v8 = vadd.f32 1e-05, %v1407_v7 }
 0x973   : > { %v1391_v9 = vpop.xlane.xlu0 %1390  ;;  %v1388_v5 = vpop.xlane.xlu1 %1387 }
 0x974   : > { %2211 = vrsqrt.f32 %v1415_v8  ;;  %v1409_v43 = vmul.f32 0.03125, %v1391_v9  ;;  %v1408_v20 = vmul.f32 0.03125, %v1388_v5 }
 0x976   : > { %v1417_v24 = vadd.f32 1e-05, %v1409_v43  ;;  %v1416_v10 = vadd.f32 1e-05, %v1408_v20 }
 0x977   : > { %v1394_v13 = vpop.xlane.xlu1 %1393 }
 0x978   : > { %2213 = vrsqrt.f32 %v1417_v24  ;;  %v1410_v47 = vmul.f32 0.03125, %v1394_v13  ;;  %v2130_v13 = vld [vmem:[%s2786_s10] sm:$0xff]  }
 0x979   : > { %2215 = vrsqrt.f32 %v1416_v10 }
 0x97a   : > { %v1418_v49 = vadd.f32 1e-05, %v1410_v47  ;;  %v1889_v47 = vld [vmem:[%s2785_s9] ss:$0 sm:$0xff] }
 0x97b   : > { %v1397_v14 = vpop.xlane.xlu0 %1396 }
 0x97c   : > { %2217 = vrsqrt.f32 %v1418_v49  ;;  %v1411_v12 = vmul.f32 0.03125, %v1397_v14 }
 0x97e   : > { %v1419_v16 = vadd.f32 1e-05, %v1411_v12  ;;  %v1400_v18 = vpop.xlane.xlu1 %1399 }
 0x97f   : > { %v1412_v53 = vmul.f32 0.03125, %v1400_v18  ;;  %v1403_v19 = vpop.xlane.xlu0 %1402 }
 0x980   : > { %2219 = vrsqrt.f32 %v1419_v16  ;;  %v1413_v21 = vmul.f32 0.03125, %v1403_v19 }
 0x981   : > { %v2212_v22 = vpop.eup %2211  ;;  %v1420_v23 = vadd.f32 1e-05, %v1412_v53 }
 0x982   : > { %v1421_v28 = vadd.f32 1e-05, %v1413_v21  ;;  %v1406_v31 = vpop.xlane.xlu1 %1405  ;;  %v1431_v37 = vmul.f32 %v2212_v22, %v2646_v48 }
 0x983   : > { %2221 = vrsqrt.f32 %v1420_v23  ;;  %v1414_v35 = vmul.f32 0.03125, %v1406_v31 }
 0x984   : > { %2223 = vrsqrt.f32 %v1421_v28  ;;  %v1446_v39 = vmul.f32 %v1887_v30, %v1431_v37 }
 0x985   : > { %v2214_v38 = vpop.eup %2213  ;;  %v1422_v40 = vadd.f32 1e-05, %v1414_v35 }
 0x986   : > { %v2216_v51 = vpop.eup %2215  ;;  %v1433_v54 = vmul.f32 %v2214_v38, %v2651_v17  ;;  %v1461_v59 = vadd.f32 %v1888_v32, %v1446_v39 }
 0x987   : > { %2225 = vrsqrt.f32 %v1422_v40  ;;  %v1432_v50 = vmul.f32 %v2216_v51, %v2654_v27 }
 0x988   : > { %v1448_v57 = vmul.f32 %v1887_v30, %v1433_v54 }
 0x989   : > { %v2218_v56 = vpop.eup %2217  ;;  %v1447_v48 = vmul.f32 %v1887_v30, %v1432_v50 }
 0x98a   : > { %v1434_v58 = vmul.f32 %v2218_v56, %v2662_v26  ;;  %v1463_v60 = vadd.f32 %v1888_v32, %v1448_v57 }
 0x98b   : > { %v1462_v34 = vadd.f32 %v1888_v32, %v1447_v48 }
 0x98c   : > { %v1449_v36 = vmul.f32 %v1887_v30, %v1434_v58 }
 0x98d   : > { %v2220_v33 = vpop.eup %2219  ;;  %v1469_v29 = vpack.c.bf16 %v1462_v34, %v1461_v59 }
 0x98e   : > { %v1464_v17 = vadd.f32 %v1888_v32, %v1449_v36  ;;  %v1435_v41 = vmul.f32 %v2220_v33, %v2669_v55 }
 0x98f   : > { %2077 = vmatprep.mubr.msk.bf16.mxu1 %vm458_vm0, %v1469_v29 }
 0x990   : > { %v2222_v27 = vpop.eup %2221  ;;  %v1470_v46 = vpack.c.bf16 %v1464_v17, %v1463_v60  ;;  %v1450_v4 = vmul.f32 %v1887_v30, %v1435_v41 }
 0x991   : > { %v2224_v42 = vpop.eup %2223  ;;  %v1436_v0 = vmul.f32 %v2222_v27, %v2675_v62  ;;  %v2127_v62 = vld [vmem:[%s2786_s10 + $0x18] sm:$0xff]  }
 0x992   : > { %2078 = vmatmul.mubr.msk.bf16.vlgmr.msra.gmra.mxu1 %vm458_vm0, %v1470_v46  ;;  %v1437_v26 = vmul.f32 %v2224_v42, %v2678_v63  ;;  %v1465_v7 = vadd.f32 %v1888_v32, %v1450_v4  ;;  %2085 = vmatprep.subr.bf16.mxu0 %v2127_v62  ;;  %v2128_v63 = vld [vmem:[%s2786_s10 + $0x10] sm:$0xff]  }
 0x993   : > { %v1451_v1 = vmul.f32 %v1887_v30, %v1436_v0  ;;  %2086 = vmatpush3.bf16.msra.mxu0 %v2127_v62 }
 0x994   : > { %v2226_v45 = vpop.eup %2225  ;;  %v1452_v5 = vmul.f32 %v1887_v30, %v1437_v26  ;;  %2087 = vmatprep.subr.bf16.mxu0 %v2128_v63 }
 0x995   : > { %v1466_v8 = vadd.f32 %v1888_v32, %v1451_v1  ;;  %v1438_v9 = vmul.f32 %v2226_v45, %v2686_v61  ;;  %v2129_v61 = vld [vmem:[%s2786_s10 + $0x8] sm:$0xff]  }
 0x996   : > { %v1467_v20 = vadd.f32 %v1888_v32, %v1452_v5 }
 0x997   : > { %v1471_v55 = vpack.c.bf16 %v1466_v8, %v1465_v7  ;;  %v1453_v43 = vmul.f32 %v1887_v30, %v1438_v9  ;;  %2088 = vmatpush3.bf16.msra.mxu0 %v2128_v63 }
 0x998   : > { %2089 = vmatprep.subr.bf16.mxu0 %v2129_v61 }
 0x999   : > { %2081 = vmatprep.mubr.msk.bf16.mxu1 %vm458_vm0, %v1471_v55  ;;  %v1468_v24 = vadd.f32 %v1888_v32, %v1453_v43 }
 0x99b   : > { %v1472_v10 = vpack.c.bf16 %v1468_v24, %v1467_v20  ;;  %2090 = vmatpush3.bf16.msra.mxu0 %v2129_v61 }
 0x99c   : > { %2091 = vmatprep.subr.bf16.mxu0 %v2130_v13 }
 0x99d   : > { %2082 = vmatmul.mubr.msk.bf16.gmra.mxu1 %vm458_vm0, %v1472_v10 }
 0x99f   : > { %2092 = vmatpush3.bf16.msra.mxu0 %v2130_v13 }
 0xa52   : > { %v2079_v49 = vpop.f32.mrf.mxu1 }
 0xa53   : > { %v1551_v14 = vadd.f32 %v2079_v49, %v1889_v47 }
 0xa54   : > { %v1542_v12 = vpop.f32.mrf.mxu1 }
 0xa55   : > { %v1543_v16 = vadd.f32 %v1889_v47, %v1542_v12  ;;  %v1583_v18 = vmul.f32 0.70710677, %v1551_v14  ;;  %v1575_v46 = vmul.f32 0.5, %v1551_v14 }
 0xa56   : > { %v2080_v53 = vpop.f32.mrf.mxu1 }
 0xa57   : > { %v1581_v19 = vmul.f32 0.70710677, %v1543_v16  ;;  %v1554_v21 = vadd.f32 %v2080_v53, %v1889_v47  ;;  %v1573_v17 = vmul.f32 0.5, %v1543_v16 }
 0xa58   : > { %v1545_v22 = vpop.f32.mrf.mxu1 }
 0xa59   : > { %2227 = verf.f32 %v1581_v19  ;;  %v1584_v23 = vmul.f32 0.70710677, %v1554_v21  ;;  %v1546_v28 = vadd.f32 %v1889_v47, %v1545_v22  ;;  %v1576_v60 = vmul.f32 0.5, %v1554_v21  ;;  %v1905_v19 = vld [vmem:[%s2788_s12] ss:$0 sm:$0xff] }
 0xa5a   : > { %2229 = verf.f32 %v1583_v18  ;;  %v1896_v18 = vld [vmem:[%s2787_s11] ss:$0 sm:$0xff] }
 0xa5b   : > { %2231 = verf.f32 %v1584_v23  ;;  %v1582_v31 = vmul.f32 0.70710677, %v1546_v28  ;;  %v1574_v41 = vmul.f32 0.5, %v1546_v28 }
 0xa5d   : > { %2233 = verf.f32 %v1582_v31  ;;  %v2083_v35 = vpop.f32.mrf.mxu1 }
 0xa5e   : > { %v1567_v37 = vadd.f32 %v2083_v35, %v1889_v47 }
 0xa5f   : > { %v1558_v30 = vpop.f32.mrf.mxu1 }
 0xa60   : > { %v1559_v38 = vadd.f32 %v1889_v47, %v1558_v30  ;;  %v1587_v40 = vmul.f32 0.70710677, %v1567_v37  ;;  %v1579_v61 = vmul.f32 0.5, %v1567_v37 }
 0xa61   : > { %v2084_v51 = vpop.f32.mrf.mxu1 }
 0xa62   : > { %v1585_v54 = vmul.f32 0.70710677, %v1559_v38  ;;  %v1570_v50 = vadd.f32 %v2084_v51, %v1889_v47  ;;  %v1577_v10 = vmul.f32 0.5, %v1559_v38 }
 0xa63   : > { %v1561_v39 = vpop.f32.mrf.mxu1 }
 0xa64   : > { %2235 = verf.f32 %v1585_v54  ;;  %v1588_v32 = vmul.f32 0.70710677, %v1570_v50  ;;  %v1562_v56 = vadd.f32 %v1889_v47, %v1561_v39  ;;  %v1580_v24 = vmul.f32 0.5, %v1570_v50 }
 0xa65   : > { %2237 = verf.f32 %v1587_v40 }
 0xa66   : > { %v2228_v48 = vpop.eup %2227  ;;  %2239 = verf.f32 %v1588_v32  ;;  %v1586_v57 = vmul.f32 0.70710677, %v1562_v56  ;;  %v1578_v62 = vmul.f32 0.5, %v1562_v56 }
 0xa67   : > { %v2230_v58 = vpop.eup %2229  ;;  %v1597_v34 = vadd.f32 1.0, %v2228_v48 }
 0xa68   : > { %v2232_v59 = vpop.eup %2231  ;;  %2241 = verf.f32 %v1586_v57  ;;  %v1599_v29 = vadd.f32 1.0, %v2230_v58 }
 0xa69   : > { %v1600_v36 = vadd.f32 1.0, %v2232_v59  ;;  %v1605_v0 = vmul.f32 %v1597_v34, %v1573_v17 }
 0xa6a   : > { %v2234_v33 = vpop.eup %2233  ;;  %v1607_v26 = vmul.f32 %v1599_v29, %v1575_v46 }
 0xa6b   : > { %v1598_v27 = vadd.f32 1.0, %v2234_v33  ;;  %v1608_v42 = vmul.f32 %v1600_v36, %v1576_v60 }
 0xa6d   : > { %v1606_v4 = vmul.f32 %v1598_v27, %v1574_v41  ;;  %v1614_v45 = vpack.c.bf16 %v1608_v42, %v1607_v26 }
 0xa6f   : > { %v1613_v1 = vpack.c.bf16 %v1606_v4, %v1605_v0 }
 0xa71   : > { %v2236_v7 = vpop.eup %2235  ;;  %2093 = vmatprep.mubr.msk.bf16.mxu0 %vm804_vm2, %v1613_v1 }
 0xa72   : > { %v2238_v8 = vpop.eup %2237  ;;  %2094 = vmatmul.mubr.msk.bf16.vlgmr.msra.gmra.mxu0 %vm804_vm2, %v1614_v45  ;;  %v1601_v5 = vadd.f32 1.0, %v2236_v7 }
 0xa73   : > { %v2240_v9 = vpop.eup %2239  ;;  %v1603_v20 = vadd.f32 1.0, %v2238_v8 }
 0xa74   : > { %v1604_v55 = vadd.f32 1.0, %v2240_v9  ;;  %v1609_v47 = vmul.f32 %v1601_v5, %v1577_v10 }
 0xa75   : > { %v2242_v43 = vpop.eup %2241  ;;  %v1611_v14 = vmul.f32 %v1603_v20, %v1579_v61 }
 0xa76   : > { %v1602_v63 = vadd.f32 1.0, %v2242_v43  ;;  %v1612_v13 = vmul.f32 %v1604_v55, %v1580_v24 }
 0xa78   : > { %v1610_v49 = vmul.f32 %v1602_v63, %v1578_v62  ;;  %v1616_v16 = vpack.c.bf16 %v1612_v13, %v1611_v14 }
 0xa7a   : > { %v1615_v12 = vpack.c.bf16 %v1610_v49, %v1609_v47 }
 0xa7c   : > { %2097 = vmatprep.mubr.msk.bf16.mxu0 %vm804_vm2, %v1615_v12 }
 0xa7d   : > { %2098 = vmatmul.mubr.msk.bf16.gmra.mxu0 %vm804_vm2, %v1616_v16 }
 0xb32   : > { %v2095_v53 = vpop.f32.mrf.mxu0 }
 0xb33   : > { %v1711_v21 = vadd.f32 %v2095_v53, %v1896_v18 }
 0xb34   : > { %v1702_v22 = vpop.f32.mrf.mxu0 }
 0xb35   : > { %v1742_v23 = vmul.f32 %v1905_v19, %v1711_v21  ;;  %v1703_v28 = vadd.f32 %v1896_v18, %v1702_v22 }
 0xb36   : > { %v2096_v31 = vpop.f32.mrf.mxu0 }
 0xb37   : > { %v1750_v35 = vadd.f32 %v1742_v23, %v2601_v44  ;;  %v1740_v37 = vmul.f32 %v1905_v19, %v1703_v28  ;;  %v1714_v30 = vadd.f32 %v2096_v31, %v1896_v18 }
 0xb38   : > { %v1705_v38 = vpop.f32.mrf.mxu0 }
 0xb39   : > { %v1920_v40 = vpack.c.bf16 %v1750_v35, %v1750_v35  ;;  %v1748_v51 = vadd.f32 %v1740_v37, %v2592_v25  ;;  %v1743_v54 = vmul.f32 %v1905_v19, %v1714_v30  ;;  %v1706_v50 = vadd.f32 %v1896_v18, %v1705_v38 }
 0xb3b   : > { %1791 = vst.msk [vmem:[%s2748_s14 + $0x8] sm:$0xf] %vm1788_vm3, %v1920_v40  ;;  %v1918_v44 = vpack.c.bf16 %v1748_v51, %v1748_v51  ;;  %v1751_v39 = vadd.f32 %v1743_v54, %v2613_v3  ;;  %v1741_v32 = vmul.f32 %v1905_v19, %v1706_v50 }
 0xb3d   : > { %1789 = vst.msk [vmem:[%s2748_s14] sm:$0xf] %vm1788_vm3, %v1918_v44  ;;  %v1921_v56 = vpack.c.bf16 %v1751_v39, %v1751_v39  ;;  %v1749_v48 = vadd.f32 %v1741_v32, %v2604_v2  ;;  %v2099_v57 = vpop.f32.mrf.mxu0 }
 0xb3e   : > { %v1727_v58 = vadd.f32 %v2099_v57, %v1896_v18 }
 0xb3f   : > { %1792 = vst.msk [vmem:[%s2748_s14 + $0xc] sm:$0xf] %vm1788_vm3, %v1921_v56  ;;  %v1919_v25 = vpack.c.bf16 %v1749_v48, %v1749_v48  ;;  %v1718_v59 = vpop.f32.mrf.mxu0 }
 0xb40   : > { %v1746_v34 = vmul.f32 %v1905_v19, %v1727_v58  ;;  %v1719_v36 = vadd.f32 %v1896_v18, %v1718_v59 }
 0xb41   : > { %1790 = vst.msk [vmem:[%s2748_s14 + $0x4] sm:$0xf] %vm1788_vm3, %v1919_v25  ;;  %v2100_v33 = vpop.f32.mrf.mxu0 }
 0xb42   : > { %v1754_v3 = vadd.f32 %v1746_v34, %v2629_v52  ;;  %v1744_v29 = vmul.f32 %v1905_v19, %v1719_v36  ;;  %v1730_v60 = vadd.f32 %v2100_v33, %v1896_v18 }
 0xb43   : > { %v1721_v2 = vpop.f32.mrf.mxu0 }
 0xb44   : > { %v1924_v17 = vpack.c.bf16 %v1754_v3, %v1754_v3  ;;  %v1752_v41 = vadd.f32 %v1744_v29, %v2620_v6  ;;  %v1747_v27 = vmul.f32 %v1905_v19, %v1730_v60  ;;  %v1722_v46 = vadd.f32 %v1896_v18, %v1721_v2 }
 0xb46   : > { %1795 = vst.msk [vmem:[%s2748_s14 + $0x18] sm:$0xf] %vm1788_vm3, %v1924_v17  ;;  %v1922_v42 = vpack.c.bf16 %v1752_v41, %v1752_v41  ;;  %v1755_v0 = vadd.f32 %v1747_v27, %v2641_v15  ;;  %v1745_v4 = vmul.f32 %v1905_v19, %v1722_v46 }
 0xb48   : > { %1793 = vst.msk [vmem:[%s2748_s14 + $0x10] sm:$0xf] %vm1788_vm3, %v1922_v42  ;;  %v1925_v26 = vpack.c.bf16 %v1755_v0, %v1755_v0  ;;  %v1753_v52 = vadd.f32 %v1745_v4, %v2632_v11 }
 0xb4a   : > { %1796 = vst.msk [vmem:[%s2748_s14 + $0x1c] sm:$0xf] %vm1788_vm3, %v1925_v26  ;;  %v1923_v1 = vpack.c.bf16 %v1753_v52, %v1753_v52 }
 0xb4c   : > { %1794 = vst.msk [vmem:[%s2748_s14 + $0x14] sm:$0xf] %vm1788_vm3, %v1923_v1 }
 0xb4d PF: > { %s23_s25 = sadd.s32 1, %s2249_s25  }
 0xb4e   : > { %p20_p4 = scmp.ge.s32.totalorder %s23_s25, 4  }
 0xb50   :  { %22 = sbr.rel (!%p20_p4) target bundleno = 1 (0x1), region = 102 }

</bundles_post_ra>
